<compile_context>
chip_gen: v7x
topology: tpu7x:2x2x1
jax: 0.10.0
libtpu: 0.0.40
codegen_flags: <defaults>
</compile_context>

<pallas_src>
import functools

import jax
import jax.numpy as jnp
from jax.experimental import pallas as pl
from jax.experimental.pallas import tpu as pltpu

# ---- constants from the PyTorch module ----
EMBED_SIZE = 256
FORWARD_EXPANSION = 2
HIDDEN = FORWARD_EXPANSION * EMBED_SIZE
MAX_LEN = 60
NUM_LAYERS = 3
HEADS = 4
HEAD_DIM = EMBED_SIZE // HEADS
LN_EPS = 1e-5                      # torch.nn.LayerNorm default
ATTN_SCALE = 1.0 / (EMBED_SIZE ** 0.5)   # reference divides by sqrt(embed_size)

_VMEM_LIMIT = 32 * 1024 * 1024


def _replicated(shape):
    """BlockSpec for a weight that is identical for every grid step."""
    n = len(shape)
    return pl.BlockSpec(shape, lambda b, _n=n: (0,) * _n)


# ===================== fused attention sublayer kernel =====================
#   out = LayerNorm( (softmax_heads(mask(Q K^T)) V) @ Wo + bo + x_query )

def _attn_sublayer_kernel(xq_ref, xkv_ref, m_ref, wq_ref, wk_ref, wv_ref,
                          wo_ref, bo_ref, g_ref, beta_ref, o_ref):
    xq = xq_ref[0]          # (Lq, E)
    xkv = xkv_ref[0]        # (Lk, E)
    m = m_ref[0]            # (Lq, Lk) float {0, 1}

    # block-diagonal folded projections: one K=256 matmul each (no bias,
    # matching Linear(head_dim, head_dim, bias=False) shared across heads)
    q = jnp.dot(xq, wq_ref[...], preferred_element_type=jnp.float32)
    k = jnp.dot(xkv, wk_ref[...], preferred_element_type=jnp.float32)
    v = jnp.dot(xkv, wv_ref[...], preferred_element_type=jnp.float32)

    heads_out = []
    for h in range(HEADS):                       # static, unrolled
        lo, hi = h * HEAD_DIM, (h + 1) * HEAD_DIM
        qh, kh, vh = q[:, lo:hi], k[:, lo:hi], v[:, lo:hi]
        # energy = qh @ kh^T  (contract on head_dim, no explicit transpose)
        e = jax.lax.dot_general(qh, kh, (((1,), (1,)), ((), ())),
                                preferred_element_type=jnp.float32)
        e = jnp.where(m == 0.0, -1e20, e)        # masked_fill BEFORE scaling
        logits = e * ATTN_SCALE
        mx = jnp.max(logits, axis=-1, keepdims=True)
        ex = jnp.exp(logits - mx)
        inv = pl.reciprocal(jnp.sum(ex, axis=-1, keepdims=True), approx=True)
        p = ex * inv
        heads_out.append(jnp.dot(p, vh, preferred_element_type=jnp.float32))

    attn = jnp.concatenate(heads_out, axis=-1)   # (Lq, E) lane-dense

    y = jnp.dot(attn, wo_ref[...], preferred_element_type=jnp.float32)
    y = y + bo_ref[...]
    y = y + xq                                   # residual = query input

    mean = jnp.mean(y, axis=-1, keepdims=True)
    var = jnp.mean(jnp.square(y - mean), axis=-1, keepdims=True)
    yhat = (y - mean) * jax.lax.rsqrt(var + LN_EPS)
    o_ref[0] = yhat * g_ref[...] + beta_ref[...]


def attention_sublayer(xq, xkv, mask, wq_bd, wk_bd, wv_bd, wo, bo, gamma, beta):
    """Fused attention sublayer.

    xq   : (N, Lq, E) query source (also the residual)
    xkv  : (N, Lk, E) key/value source
    mask : (N, Lq, Lk) float {0,1}
    ->     (N, Lq, E) = LayerNorm(attention + xq)
    """
    N, Lq, E = xq.shape
    Lk = xkv.shape[1]
    return pl.pallas_call(
        _attn_sublayer_kernel,
        out_shape=jax.ShapeDtypeStruct((N, Lq, E), jnp.float32),
        grid=(N,),
        in_specs=[
            pl.BlockSpec((1, Lq, E), lambda b: (b, 0, 0)),
            pl.BlockSpec((1, Lk, E), lambda b: (b, 0, 0)),
            pl.BlockSpec((1, Lq, Lk), lambda b: (b, 0, 0)),
            _replicated((E, E)),      # wq (block-diag)
            _replicated((E, E)),      # wk
            _replicated((E, E)),      # wv
            _replicated((E, E)),      # wo
            _replicated((1, E)),      # bo
            _replicated((1, E)),      # ln gamma
            _replicated((1, E)),      # ln beta
        ],
        out_specs=pl.BlockSpec((1, Lq, E), lambda b: (b, 0, 0)),
        compiler_params=pltpu.CompilerParams(
            dimension_semantics=("parallel",),
            vmem_limit_bytes=_VMEM_LIMIT),
    )(xq, xkv, mask, wq_bd, wk_bd, wv_bd, wo,
      bo.reshape(1, E), gamma.reshape(1, E), beta.reshape(1, E))


# ======================= fused FFN sublayer kernel =========================
#   out = LayerNorm( relu(x W1 + b1) W2 + b2 + x )

def _ffn_sublayer_kernel(x_ref, w1_ref, b1_ref, w2_ref, b2_ref,
                         g_ref, beta_ref, o_ref):
    x = x_ref[0]                                              # (L, E)
    h = jnp.dot(x, w1_ref[...], preferred_element_type=jnp.float32)
    h = jnp.maximum(h + b1_ref[...], 0.0)                     # (L, HIDDEN)
    y = jnp.dot(h, w2_ref[...], preferred_element_type=jnp.float32)
    y = y + b2_ref[...]
    y = y + x                                                 # residual
    mean = jnp.mean(y, axis=-1, keepdims=True)
    var = jnp.mean(jnp.square(y - mean), axis=-1, keepdims=True)
    yhat = (y - mean) * jax.lax.rsqrt(var + LN_EPS)
    o_ref[0] = yhat * g_ref[...] + beta_ref[...]


def ffn_sublayer(x, w1, b1, w2, b2, gamma, beta):
    N, L, E = x.shape
    H = w1.shape[1]
    return pl.pallas_call(
        _ffn_sublayer_kernel,
        out_shape=jax.ShapeDtypeStruct((N, L, E), jnp.float32),
        grid=(N,),
        in_specs=[
            pl.BlockSpec((1, L, E), lambda b: (b, 0, 0)),
            _replicated((E, H)),
            _replicated((1, H)),
            _replicated((H, E)),
            _replicated((1, E)),
            _replicated((1, E)),
            _replicated((1, E)),
        ],
        out_specs=pl.BlockSpec((1, L, E), lambda b: (b, 0, 0)),
        compiler_params=pltpu.CompilerParams(
            dimension_semantics=("parallel",),
            vmem_limit_bytes=_VMEM_LIMIT),
    )(x, w1, b1.reshape(1, H), w2, b2.reshape(1, E),
      gamma.reshape(1, E), beta.reshape(1, E))


# ===================== final vocab projection (padded) =====================

def _proj_kernel(x_ref, w_ref, b_ref, o_ref):
    o_ref[...] = (jnp.dot(x_ref[...], w_ref[...],
                          preferred_element_type=jnp.float32) + b_ref[...])


def output_projection(x, w, b):
    """x:(M,E) @ w:(E,V) + b, with V padded to a multiple of 128 for
    unmasked lane-dense stores; the pad is sliced off afterwards."""
    M, E = x.shape
    V = w.shape[1]
    Vp = pl.cdiv(V, 128) * 128
    w_p = jnp.pad(w, ((0, 0), (0, Vp - V)))
    b_p = jnp.pad(b, ((0, Vp - V),)).reshape(1, Vp)
    out = pl.pallas_call(
        _proj_kernel,
        out_shape=jax.ShapeDtypeStruct((M, Vp), jnp.float32),
        compiler_params=pltpu.CompilerParams(vmem_limit_bytes=_VMEM_LIMIT),
    )(x, w_p, b_p)
    return out[:, :V]


# ============================ model (JAX glue) ============================

def _fold_heads(w):
    # The reference shares ONE Linear(head_dim, head_dim) across all heads.
    # kron(I_HEADS, w) builds the equivalent block-diagonal (E, E) weight so
    # the per-head projection becomes a single K=256 matmul.
    return jnp.kron(jnp.eye(HEADS, dtype=w.dtype), w)


def self_attn_sublayer(attn_p, ln_g, ln_b, xq, xkv, mask):
    return attention_sublayer(
        xq, xkv, mask,
        _fold_heads(attn_p["w_q"]),
        _fold_heads(attn_p["w_k"]),
        _fold_heads(attn_p["w_v"]),
        attn_p["w_o"], attn_p["b_o"], ln_g, ln_b)


def transformer_block(p, x_kv, x_q, mask):
    # x = LN1(attention(value=key=x_kv, query=x_q) + x_q); out = LN2(FFN(x)+x)
    x = self_attn_sublayer(p["attn"], p["ln1_g"], p["ln1_b"], x_q, x_kv, mask)
    return ffn_sublayer(x, p["w_ff1"], p["b_ff1"], p["w_ff2"], p["b_ff2"],
                        p["ln2_g"], p["ln2_b"])


def encoder(p, src_tok, enc_mask):
    # src_tok: (N, L) int32; embedding gather stays in plain-JAX glue
    N, L = src_tok.shape
    x = jnp.take(p["word_emb"], src_tok, axis=0) + p["pos_emb"][:L][None, :, :]
    for lp in p["layers"]:
        x = transformer_block(lp, x, x, enc_mask)
    return x


def decoder(p, trg_tok, enc_out, cross_mask, trg_mask):
    N, L = trg_tok.shape
    x = jnp.take(p["word_emb"], trg_tok, axis=0) + p["pos_emb"][:L][None, :, :]
    for lp in p["layers"]:
        # masked self-attention + residual + LN (fused)
        query = self_attn_sublayer(lp["self_attn"], lp["ln_g"], lp["ln_b"],
                                   x, x, trg_mask)
        # cross-attention block against encoder output
        x = transformer_block(lp["block"], enc_out, query, cross_mask)
    logits = output_projection(x.reshape(N * L, EMBED_SIZE),
                               p["w_fc"], p["b_fc"])
    return logits.reshape(N, L, -1)


def transformer_forward(params, src, trg, src_pad_idx, trg_pad_idx):
    # src: (src_len, N), trg: (trg_len, N)  (time-major, like the torch code)
    S, N = src.shape
    T = trg.shape[0]

    src_keep = (src != src_pad_idx).T                     # (N, S)
    enc_mask = jnp.broadcast_to(src_keep[:, None, :],
                                (N, S, S)).astype(jnp.float32)
    cross_mask = jnp.broadcast_to(src_keep[:, None, :],
                                  (N, T, S)).astype(jnp.float32)
    tril = jnp.tril(jnp.ones((T, T), dtype=jnp.bool_))
    trg_keep = (trg != trg_pad_idx).T                     # (N, T)
    trg_mask = (tril[None, :, :] & trg_keep[:, :, None]).astype(jnp.float32)

    enc_out = encoder(params["encoder"], src.T, enc_mask)
    return decoder(params["decoder"], trg.T, enc_out, cross_mask, trg_mask)


# ============================ parameter init ============================

def _nrm(key, shape, scale=0.02):
    return scale * jax.random.normal(key, shape, jnp.float32)


def _init_attn(key):
    ks = jax.random.split(key, 5)
    return {
        "w_v": _nrm(ks[0], (HEAD_DIM, HEAD_DIM)),
        "w_k": _nrm(ks[1], (HEAD_DIM, HEAD_DIM)),
        "w_q": _nrm(ks[2], (HEAD_DIM, HEAD_DIM)),
        "w_o": _nrm(ks[3], (EMBED_SIZE, EMBED_SIZE)),
        "b_o": jnp.zeros((EMBED_SIZE,), jnp.float32),
    }


def _init_block(key):
    ks = jax.random.split(key, 3)
    return {
        "attn": _init_attn(ks[0]),
        "ln1_g": jnp.ones((EMBED_SIZE,), jnp.float32),
        "ln1_b": jnp.zeros((EMBED_SIZE,), jnp.float32),
        "w_ff1": _nrm(ks[1], (EMBED_SIZE, HIDDEN)),
        "b_ff1": jnp.zeros((HIDDEN,), jnp.float32),
        "w_ff2": _nrm(ks[2], (HIDDEN, EMBED_SIZE)),
        "b_ff2": jnp.zeros((EMBED_SIZE,), jnp.float32),
        "ln2_g": jnp.ones((EMBED_SIZE,), jnp.float32),
        "ln2_b": jnp.zeros((EMBED_SIZE,), jnp.float32),
    }


def init_params(key, src_vocab_size, trg_vocab_size):
    k_enc, k_dec = jax.random.split(key)
    ke = jax.random.split(k_enc, NUM_LAYERS + 2)
    kd = jax.random.split(k_dec, 2 * NUM_LAYERS + 3)
    enc = {
        "word_emb": _nrm(ke[0], (src_vocab_size, EMBED_SIZE)),
        "pos_emb": _nrm(ke[1], (MAX_LEN, EMBED_SIZE)),
        "layers": [_init_block(ke[2 + i]) for i in range(NUM_LAYERS)],
    }
    dec_layers = []
    for i in range(NUM_LAYERS):
        dec_layers.append({
            "self_attn": _init_attn(kd[2 + 2 * i]),
            "ln_g": jnp.ones((EMBED_SIZE,), jnp.float32),
            "ln_b": jnp.zeros((EMBED_SIZE,), jnp.float32),
            "block": _init_block(kd[3 + 2 * i]),
        })
    dec = {
        "word_emb": _nrm(kd[0], (trg_vocab_size, EMBED_SIZE)),
        "pos_emb": _nrm(kd[1], (MAX_LEN, EMBED_SIZE)),
        "layers": dec_layers,
        "w_fc": _nrm(kd[2 + 2 * NUM_LAYERS], (EMBED_SIZE, trg_vocab_size)),
        "b_fc": jnp.zeros((trg_vocab_size,), jnp.float32),
    }
    return {"encoder": enc, "decoder": dec}


# ============================ main ============================

if __name__ == "__main__":
    SRC_VOCAB, TRG_VOCAB = 50, 48
    SRC_PAD, TRG_PAD = 0, 0
    SRC_LEN, TRG_LEN, BATCH = 8, 8, 2

    root = jax.random.PRNGKey(0)
    k_params, k_src, k_trg = jax.random.split(root, 3)
    params = init_params(k_params, SRC_VOCAB, TRG_VOCAB)

    # time-major (seq_len, batch) token ids; keep a couple of pad tokens
    src = jax.random.randint(k_src, (SRC_LEN, BATCH), 1, SRC_VOCAB, jnp.int32)
    trg = jax.random.randint(k_trg, (TRG_LEN, BATCH), 1, TRG_VOCAB, jnp.int32)
    src = src.at[-1, 0].set(SRC_PAD)
    trg = trg.at[-1, 1].set(TRG_PAD)

    fwd = jax.jit(functools.partial(transformer_forward,
                                    src_pad_idx=SRC_PAD, trg_pad_idx=TRG_PAD))
    out = fwd(params, src, trg)
    jax.block_until_ready(out)
    assert out.shape == (BATCH, TRG_LEN, TRG_VOCAB)
    assert bool(jnp.all(jnp.isfinite(out)))
    # TODO(synk): dropout layers are identity (deterministic eval forward).
    print("KERNEL_OK")
</pallas_src>

<mosaic_0001>
module attributes {stable_mosaic.version = 11 : i64} {
  func.func @_ffn_sublayer_kernel(%arg0: i32, %arg1: memref<1x8x256xf32, #tpu.memory_space<vmem>>, %arg2: memref<256x512xf32, #tpu.memory_space<vmem>>, %arg3: memref<1x512xf32, #tpu.memory_space<vmem>>, %arg4: memref<512x256xf32, #tpu.memory_space<vmem>>, %arg5: memref<1x256xf32, #tpu.memory_space<vmem>>, %arg6: memref<1x256xf32, #tpu.memory_space<vmem>>, %arg7: memref<1x256xf32, #tpu.memory_space<vmem>>, %arg8: memref<1x8x256xf32, #tpu.memory_space<vmem>>) attributes {dimension_semantics = [#tpu.dimension_semantics<parallel>], iteration_bounds = array<i64: 2>, scalar_prefetch = 0 : i64, scratch_operands = 0 : i64, tpu.core_type = #tpu.core_type<tc>, window_params = [{transform_indices = @transform_0, window_bounds = array<i64: 1, 8, 256>}, {pipeline_mode = #tpu.pipeline_mode<synchronous>, transform_indices = @transform_1, window_bounds = array<i64: 256, 512>}, {pipeline_mode = #tpu.pipeline_mode<synchronous>, transform_indices = @transform_2, window_bounds = array<i64: 1, 512>}, {pipeline_mode = #tpu.pipeline_mode<synchronous>, transform_indices = @transform_3, window_bounds = array<i64: 512, 256>}, {pipeline_mode = #tpu.pipeline_mode<synchronous>, transform_indices = @transform_4, window_bounds = array<i64: 1, 256>}, {pipeline_mode = #tpu.pipeline_mode<synchronous>, transform_indices = @transform_5, window_bounds = array<i64: 1, 256>}, {pipeline_mode = #tpu.pipeline_mode<synchronous>, transform_indices = @transform_6, window_bounds = array<i64: 1, 256>}, {transform_indices = @transform_7, window_bounds = array<i64: 1, 8, 256>}]} {
    %c0 = arith.constant 0 : index
    %c0_0 = arith.constant 0 : index
    %c0_1 = arith.constant 0 : index
    %0 = vector.load %arg1[%c0, %c0_0, %c0_1] : memref<1x8x256xf32, #tpu.memory_space<vmem>>, vector<1x8x256xf32>
    %1 = vector.shape_cast %0 : vector<1x8x256xf32> to vector<8x256xf32>
    %c0_2 = arith.constant 0 : index
    %c0_3 = arith.constant 0 : index
    %2 = vector.load %arg2[%c0_2, %c0_3] : memref<256x512xf32, #tpu.memory_space<vmem>>, vector<256x512xf32>
    %cst = arith.constant dense<0.000000e+00> : vector<8x512xf32>
    %3 = tpu.matmul %1, %2, %cst {dimension_numbers = #tpu.dot_dimension_numbers<[1], [0], [0], [1], [0, 0, 1, 1], [], []>} : vector<8x256xf32>, vector<256x512xf32>, vector<8x512xf32> -> vector<8x512xf32>
    %c0_4 = arith.constant 0 : index
    %c0_5 = arith.constant 0 : index
    %4 = vector.load %arg3[%c0_4, %c0_5] : memref<1x512xf32, #tpu.memory_space<vmem>>, vector<1x512xf32>
    %5 = vector.broadcast %4 : vector<1x512xf32> to vector<8x512xf32>
    %6 = arith.addf %3, %5 : vector<8x512xf32>
    %cst_6 = arith.constant 0.000000e+00 : f32
    %7 = vector.broadcast %cst_6 : f32 to vector<8x512xf32>
    %8 = arith.maximumf %6, %7 : vector<8x512xf32>
    %c0_7 = arith.constant 0 : index
    %c0_8 = arith.constant 0 : index
    %9 = vector.load %arg4[%c0_7, %c0_8] : memref<512x256xf32, #tpu.memory_space<vmem>>, vector<512x256xf32>
    %cst_9 = arith.constant dense<0.000000e+00> : vector<8x256xf32>
    %10 = tpu.matmul %8, %9, %cst_9 {dimension_numbers = #tpu.dot_dimension_numbers<[1], [0], [0], [1], [0, 0, 1, 1], [], []>} : vector<8x512xf32>, vector<512x256xf32>, vector<8x256xf32> -> vector<8x256xf32>
    %c0_10 = arith.constant 0 : index
    %c0_11 = arith.constant 0 : index
    %11 = vector.load %arg5[%c0_10, %c0_11] : memref<1x256xf32, #tpu.memory_space<vmem>>, vector<1x256xf32>
    %12 = vector.broadcast %11 : vector<1x256xf32> to vector<8x256xf32>
    %13 = arith.addf %10, %12 : vector<8x256xf32>
    %14 = arith.addf %13, %1 : vector<8x256xf32>
    %cst_12 = arith.constant dense<0.000000e+00> : vector<8xf32>
    %15 = vector.multi_reduction <add>, %14, %cst_12 [1] : vector<8x256xf32> to vector<8xf32>
    %16 = vector.shape_cast %15 : vector<8xf32> to vector<8x1xf32>
    %cst_13 = arith.constant 2.560000e+02 : f32
    %17 = vector.broadcast %cst_13 : f32 to vector<8x1xf32>
    %18 = arith.divf %16, %17 : vector<8x1xf32>
    %19 = vector.broadcast %18 : vector<8x1xf32> to vector<8x256xf32>
    %20 = arith.subf %14, %19 : vector<8x256xf32>
    %21 = arith.mulf %20, %20 : vector<8x256xf32>
    %cst_14 = arith.constant dense<0.000000e+00> : vector<8xf32>
    %22 = vector.multi_reduction <add>, %21, %cst_14 [1] : vector<8x256xf32> to vector<8xf32>
    %23 = vector.shape_cast %22 : vector<8xf32> to vector<8x1xf32>
    %cst_15 = arith.constant 2.560000e+02 : f32
    %24 = vector.broadcast %cst_15 : f32 to vector<8x1xf32>
    %25 = arith.divf %23, %24 : vector<8x1xf32>
    %26 = vector.broadcast %18 : vector<8x1xf32> to vector<8x256xf32>
    %27 = arith.subf %14, %26 : vector<8x256xf32>
    %cst_16 = arith.constant 9.99999974E-6 : f32
    %28 = vector.broadcast %cst_16 : f32 to vector<8x1xf32>
    %29 = arith.addf %25, %28 : vector<8x1xf32>
    %30 = math.rsqrt %29 : vector<8x1xf32>
    %31 = vector.broadcast %30 : vector<8x1xf32> to vector<8x256xf32>
    %32 = arith.mulf %27, %31 : vector<8x256xf32>
    %c0_17 = arith.constant 0 : index
    %c0_18 = arith.constant 0 : index
    %33 = vector.load %arg6[%c0_17, %c0_18] : memref<1x256xf32, #tpu.memory_space<vmem>>, vector<1x256xf32>
    %34 = vector.broadcast %33 : vector<1x256xf32> to vector<8x256xf32>
    %35 = arith.mulf %32, %34 : vector<8x256xf32>
    %c0_19 = arith.constant 0 : index
    %c0_20 = arith.constant 0 : index
    %36 = vector.load %arg7[%c0_19, %c0_20] : memref<1x256xf32, #tpu.memory_space<vmem>>, vector<1x256xf32>
    %37 = vector.broadcast %36 : vector<1x256xf32> to vector<8x256xf32>
    %38 = arith.addf %35, %37 : vector<8x256xf32>
    %c0_21 = arith.constant 0 : index
    %c0_22 = arith.constant 0 : index
    %c0_23 = arith.constant 0 : index
    %39 = vector.load %arg8[%c0_21, %c0_22, %c0_23] : memref<1x8x256xf32, #tpu.memory_space<vmem>>, vector<1x8x256xf32>
    %40 = vector.shape_cast %39 : vector<1x8x256xf32> to vector<8x256xf32>
    %41 = vector.shape_cast %38 : vector<8x256xf32> to vector<1x8x256xf32>
    tpu.vector_store %arg8[%c0_21, %c0_22, %c0_23], %41 {strides = array<i32>} : memref<1x8x256xf32, #tpu.memory_space<vmem>>, vector<1x8x256xf32>,
    return
  }
  func.func @transform_0(%arg0: i32) -> (i32, i32, i32) {
    %c0_i32 = arith.constant 0 : i32
    %c0_i32_0 = arith.constant 0 : i32
    %c0_i32_1 = arith.constant 0 : i32
    return %arg0, %c0_i32, %c0_i32_0 : i32, i32, i32
  }
  func.func @transform_1(%arg0: i32) -> (i32, i32) {
    %c0_i32 = arith.constant 0 : i32
    %c0_i32_0 = arith.constant 0 : i32
    %c0_i32_1 = arith.constant 0 : i32
    return %c0_i32, %c0_i32_0 : i32, i32
  }
  func.func @transform_2(%arg0: i32) -> (i32, i32) {
    %c0_i32 = arith.constant 0 : i32
    %c0_i32_0 = arith.constant 0 : i32
    %c0_i32_1 = arith.constant 0 : i32
    return %c0_i32, %c0_i32_0 : i32, i32
  }
  func.func @transform_3(%arg0: i32) -> (i32, i32) {
    %c0_i32 = arith.constant 0 : i32
    %c0_i32_0 = arith.constant 0 : i32
    %c0_i32_1 = arith.constant 0 : i32
    return %c0_i32, %c0_i32_0 : i32, i32
  }
  func.func @transform_4(%arg0: i32) -> (i32, i32) {
    %c0_i32 = arith.constant 0 : i32
    %c0_i32_0 = arith.constant 0 : i32
    %c0_i32_1 = arith.constant 0 : i32
    return %c0_i32, %c0_i32_0 : i32, i32
  }
  func.func @transform_5(%arg0: i32) -> (i32, i32) {
    %c0_i32 = arith.constant 0 : i32
    %c0_i32_0 = arith.constant 0 : i32
    %c0_i32_1 = arith.constant 0 : i32
    return %c0_i32, %c0_i32_0 : i32, i32
  }
  func.func @transform_6(%arg0: i32) -> (i32, i32) {
    %c0_i32 = arith.constant 0 : i32
    %c0_i32_0 = arith.constant 0 : i32
    %c0_i32_1 = arith.constant 0 : i32
    return %c0_i32, %c0_i32_0 : i32, i32
  }
  func.func @transform_7(%arg0: i32) -> (i32, i32, i32) {
    %c0_i32 = arith.constant 0 : i32
    %c0_i32_0 = arith.constant 0 : i32
    %c0_i32_1 = arith.constant 0 : i32
    return %arg0, %c0_i32, %c0_i32_0 : i32, i32, i32
  }
}

module attributes {stable_mosaic.version = 11 : i64} {
  func.func @_attn_sublayer_kernel(%arg0: i32, %arg1: memref<1x8x256xf32, #tpu.memory_space<vmem>>, %arg2: memref<1x8x256xf32, #tpu.memory_space<vmem>>, %arg3: memref<1x8x8xf32, #tpu.memory_space<vmem>>, %arg4: memref<256x256xf32, #tpu.memory_space<vmem>>, %arg5: memref<256x256xf32, #tpu.memory_space<vmem>>, %arg6: memref<256x256xf32, #tpu.memory_space<vmem>>, %arg7: memref<256x256xf32, #tpu.memory_space<vmem>>, %arg8: memref<1x256xf32, #tpu.memory_space<vmem>>, %arg9: memref<1x256xf32, #tpu.memory_space<vmem>>, %arg10: memref<1x256xf32, #tpu.memory_space<vmem>>, %arg11: memref<1x8x256xf32, #tpu.memory_space<vmem>>) attributes {dimension_semantics = [#tpu.dimension_semantics<parallel>], iteration_bounds = array<i64: 2>, scalar_prefetch = 0 : i64, scratch_operands = 0 : i64, tpu.core_type = #tpu.core_type<tc>, window_params = [{transform_indices = @transform_0, window_bounds = array<i64: 1, 8, 256>}, {transform_indices = @transform_1, window_bounds = array<i64: 1, 8, 256>}, {transform_indices = @transform_2, window_bounds = array<i64: 1, 8, 8>}, {pipeline_mode = #tpu.pipeline_mode<synchronous>, transform_indices = @transform_3, window_bounds = array<i64: 256, 256>}, {pipeline_mode = #tpu.pipeline_mode<synchronous>, transform_indices = @transform_4, window_bounds = array<i64: 256, 256>}, {pipeline_mode = #tpu.pipeline_mode<synchronous>, transform_indices = @transform_5, window_bounds = array<i64: 256, 256>}, {pipeline_mode = #tpu.pipeline_mode<synchronous>, transform_indices = @transform_6, window_bounds = array<i64: 256, 256>}, {pipeline_mode = #tpu.pipeline_mode<synchronous>, transform_indices = @transform_7, window_bounds = array<i64: 1, 256>}, {pipeline_mode = #tpu.pipeline_mode<synchronous>, transform_indices = @transform_8, window_bounds = array<i64: 1, 256>}, {pipeline_mode = #tpu.pipeline_mode<synchronous>, transform_indices = @transform_9, window_bounds = array<i64: 1, 256>}, {transform_indices = @transform_10, window_bounds = array<i64: 1, 8, 256>}]} {
    %c0 = arith.constant 0 : index
    %c0_0 = arith.constant 0 : index
    %c0_1 = arith.constant 0 : index
    %0 = vector.load %arg1[%c0, %c0_0, %c0_1] : memref<1x8x256xf32, #tpu.memory_space<vmem>>, vector<1x8x256xf32>
    %1 = vector.shape_cast %0 : vector<1x8x256xf32> to vector<8x256xf32>
    %c0_2 = arith.constant 0 : index
    %c0_3 = arith.constant 0 : index
    %c0_4 = arith.constant 0 : index
    %2 = vector.load %arg2[%c0_2, %c0_3, %c0_4] : memref<1x8x256xf32, #tpu.memory_space<vmem>>, vector<1x8x256xf32>
    %3 = vector.shape_cast %2 : vector<1x8x256xf32> to vector<8x256xf32>
    %c0_5 = arith.constant 0 : index
    %c0_6 = arith.constant 0 : index
    %c0_7 = arith.constant 0 : index
    %4 = vector.load %arg3[%c0_5, %c0_6, %c0_7] : memref<1x8x8xf32, #tpu.memory_space<vmem>>, vector<1x8x8xf32>
    %5 = vector.shape_cast %4 : vector<1x8x8xf32> to vector<8x8xf32>
    %c0_8 = arith.constant 0 : index
    %c0_9 = arith.constant 0 : index
    %6 = vector.load %arg4[%c0_8, %c0_9] : memref<256x256xf32, #tpu.memory_space<vmem>>, vector<256x256xf32>
    %cst = arith.constant dense<0.000000e+00> : vector<8x256xf32>
    %7 = tpu.matmul %1, %6, %cst {dimension_numbers = #tpu.dot_dimension_numbers<[1], [0], [0], [1], [0, 0, 1, 1], [], []>} : vector<8x256xf32>, vector<256x256xf32>, vector<8x256xf32> -> vector<8x256xf32>
    %c0_10 = arith.constant 0 : index
    %c0_11 = arith.constant 0 : index
    %8 = vector.load %arg5[%c0_10, %c0_11] : memref<256x256xf32, #tpu.memory_space<vmem>>, vector<256x256xf32>
    %cst_12 = arith.constant dense<0.000000e+00> : vector<8x256xf32>
    %9 = tpu.matmul %3, %8, %cst_12 {dimension_numbers = #tpu.dot_dimension_numbers<[1], [0], [0], [1], [0, 0, 1, 1], [], []>} : vector<8x256xf32>, vector<256x256xf32>, vector<8x256xf32> -> vector<8x256xf32>
    %c0_13 = arith.constant 0 : index
    %c0_14 = arith.constant 0 : index
    %10 = vector.load %arg6[%c0_13, %c0_14] : memref<256x256xf32, #tpu.memory_space<vmem>>, vector<256x256xf32>
    %cst_15 = arith.constant dense<0.000000e+00> : vector<8x256xf32>
    %11 = tpu.matmul %3, %10, %cst_15 {dimension_numbers = #tpu.dot_dimension_numbers<[1], [0], [0], [1], [0, 0, 1, 1], [], []>} : vector<8x256xf32>, vector<256x256xf32>, vector<8x256xf32> -> vector<8x256xf32>
    %12 = vector.extract_strided_slice %7 {offsets = [0, 0], sizes = [8, 64], strides = [1, 1]} : vector<8x256xf32> to vector<8x64xf32>
    %13 = vector.extract_strided_slice %9 {offsets = [0, 0], sizes = [8, 64], strides = [1, 1]} : vector<8x256xf32> to vector<8x64xf32>
    %14 = vector.extract_strided_slice %11 {offsets = [0, 0], sizes = [8, 64], strides = [1, 1]} : vector<8x256xf32> to vector<8x64xf32>
    %cst_16 = arith.constant dense<0.000000e+00> : vector<8x8xf32>
    %15 = tpu.matmul %12, %13, %cst_16 {dimension_numbers = #tpu.dot_dimension_numbers<[1], [1], [0], [0], [0, 0, 1, 0], [], []>} : vector<8x64xf32>, vector<8x64xf32>, vector<8x8xf32> -> vector<8x8xf32>
    %cst_17 = arith.constant 0.000000e+00 : f32
    %16 = vector.broadcast %cst_17 : f32 to vector<8x8xf32>
    %17 = arith.cmpf oeq, %5, %16 : vector<8x8xf32>
    %cst_18 = arith.constant -1.000000e+20 : f32
    %18 = vector.broadcast %cst_18 : f32 to vector<8x8xf32>
    %19 = arith.select %17, %18, %15 : vector<8x8xi1>, vector<8x8xf32>
    %cst_19 = arith.constant 6.250000e-02 : f32
    %20 = vector.broadcast %cst_19 : f32 to vector<8x8xf32>
    %21 = arith.mulf %19, %20 : vector<8x8xf32>
    %cst_20 = arith.constant dense<0xFF800000> : vector<8xf32>
    %22 = vector.multi_reduction <maximumf>, %21, %cst_20 [1] : vector<8x8xf32> to vector<8xf32>
    %23 = vector.shape_cast %22 : vector<8xf32> to vector<8x1xf32>
    %24 = vector.broadcast %23 : vector<8x1xf32> to vector<8x8xf32>
    %25 = arith.subf %21, %24 : vector<8x8xf32>
    %26 = math.exp %25 : vector<8x8xf32>
    %cst_21 = arith.constant dense<0.000000e+00> : vector<8xf32>
    %27 = vector.multi_reduction <add>, %26, %cst_21 [1] : vector<8x8xf32> to vector<8xf32>
    %28 = vector.shape_cast %27 : vector<8xf32> to vector<8x1xf32>
    %29 = tpu.reciprocal %28 {approx = true} : vector<8x1xf32> -> vector<8x1xf32>
    %30 = vector.broadcast %29 : vector<8x1xf32> to vector<8x8xf32>
    %31 = arith.mulf %26, %30 : vector<8x8xf32>
    %cst_22 = arith.constant dense<0.000000e+00> : vector<8x64xf32>
    %32 = tpu.matmul %31, %14, %cst_22 {dimension_numbers = #tpu.dot_dimension_numbers<[1], [0], [0], [1], [0, 0, 1, 1], [], []>} : vector<8x8xf32>, vector<8x64xf32>, vector<8x64xf32> -> vector<8x64xf32>
    %33 = vector.extract_strided_slice %7 {offsets = [0, 64], sizes = [8, 64], strides = [1, 1]} : vector<8x256xf32> to vector<8x64xf32>
    %34 = vector.extract_strided_slice %9 {offsets = [0, 64], sizes = [8, 64], strides = [1, 1]} : vector<8x256xf32> to vector<8x64xf32>
    %35 = vector.extract_strided_slice %11 {offsets = [0, 64], sizes = [8, 64], strides = [1, 1]} : vector<8x256xf32> to vector<8x64xf32>
    %cst_23 = arith.constant dense<0.000000e+00> : vector<8x8xf32>
    %36 = tpu.matmul %33, %34, %cst_23 {dimension_numbers = #tpu.dot_dimension_numbers<[1], [1], [0], [0], [0, 0, 1, 0], [], []>} : vector<8x64xf32>, vector<8x64xf32>, vector<8x8xf32> -> vector<8x8xf32>
    %cst_24 = arith.constant 0.000000e+00 : f32
    %37 = vector.broadcast %cst_24 : f32 to vector<8x8xf32>
    %38 = arith.cmpf oeq, %5, %37 : vector<8x8xf32>
    %cst_25 = arith.constant -1.000000e+20 : f32
    %39 = vector.broadcast %cst_25 : f32 to vector<8x8xf32>
    %40 = arith.select %38, %39, %36 : vector<8x8xi1>, vector<8x8xf32>
    %cst_26 = arith.constant 6.250000e-02 : f32
    %41 = vector.broadcast %cst_26 : f32 to vector<8x8xf32>
    %42 = arith.mulf %40, %41 : vector<8x8xf32>
    %cst_27 = arith.constant dense<0xFF800000> : vector<8xf32>
    %43 = vector.multi_reduction <maximumf>, %42, %cst_27 [1] : vector<8x8xf32> to vector<8xf32>
    %44 = vector.shape_cast %43 : vector<8xf32> to vector<8x1xf32>
    %45 = vector.broadcast %44 : vector<8x1xf32> to vector<8x8xf32>
    %46 = arith.subf %42, %45 : vector<8x8xf32>
    %47 = math.exp %46 : vector<8x8xf32>
    %cst_28 = arith.constant dense<0.000000e+00> : vector<8xf32>
    %48 = vector.multi_reduction <add>, %47, %cst_28 [1] : vector<8x8xf32> to vector<8xf32>
    %49 = vector.shape_cast %48 : vector<8xf32> to vector<8x1xf32>
    %50 = tpu.reciprocal %49 {approx = true} : vector<8x1xf32> -> vector<8x1xf32>
    %51 = vector.broadcast %50 : vector<8x1xf32> to vector<8x8xf32>
    %52 = arith.mulf %47, %51 : vector<8x8xf32>
    %cst_29 = arith.constant dense<0.000000e+00> : vector<8x64xf32>
    %53 = tpu.matmul %52, %35, %cst_29 {dimension_numbers = #tpu.dot_dimension_numbers<[1], [0], [0], [1], [0, 0, 1, 1], [], []>} : vector<8x8xf32>, vector<8x64xf32>, vector<8x64xf32> -> vector<8x64xf32>
    %54 = vector.extract_strided_slice %7 {offsets = [0, 128], sizes = [8, 64], strides = [1, 1]} : vector<8x256xf32> to vector<8x64xf32>
    %55 = vector.extract_strided_slice %9 {offsets = [0, 128], sizes = [8, 64], strides = [1, 1]} : vector<8x256xf32> to vector<8x64xf32>
    %56 = vector.extract_strided_slice %11 {offsets = [0, 128], sizes = [8, 64], strides = [1, 1]} : vector<8x256xf32> to vector<8x64xf32>
    %cst_30 = arith.constant dense<0.000000e+00> : vector<8x8xf32>
    %57 = tpu.matmul %54, %55, %cst_30 {dimension_numbers = #tpu.dot_dimension_numbers<[1], [1], [0], [0], [0, 0, 1, 0], [], []>} : vector<8x64xf32>, vector<8x64xf32>, vector<8x8xf32> -> vector<8x8xf32>
    %cst_31 = arith.constant 0.000000e+00 : f32
    %58 = vector.broadcast %cst_31 : f32 to vector<8x8xf32>
    %59 = arith.cmpf oeq, %5, %58 : vector<8x8xf32>
    %cst_32 = arith.constant -1.000000e+20 : f32
    %60 = vector.broadcast %cst_32 : f32 to vector<8x8xf32>
    %61 = arith.select %59, %60, %57 : vector<8x8xi1>, vector<8x8xf32>
    %cst_33 = arith.constant 6.250000e-02 : f32
    %62 = vector.broadcast %cst_33 : f32 to vector<8x8xf32>
    %63 = arith.mulf %61, %62 : vector<8x8xf32>
    %cst_34 = arith.constant dense<0xFF800000> : vector<8xf32>
    %64 = vector.multi_reduction <maximumf>, %63, %cst_34 [1] : vector<8x8xf32> to vector<8xf32>
    %65 = vector.shape_cast %64 : vector<8xf32> to vector<8x1xf32>
    %66 = vector.broadcast %65 : vector<8x1xf32> to vector<8x8xf32>
    %67 = arith.subf %63, %66 : vector<8x8xf32>
    %68 = math.exp %67 : vector<8x8xf32>
    %cst_35 = arith.constant dense<0.000000e+00> : vector<8xf32>
    %69 = vector.multi_reduction <add>, %68, %cst_35 [1] : vector<8x8xf32> to vector<8xf32>
    %70 = vector.shape_cast %69 : vector<8xf32> to vector<8x1xf32>
    %71 = tpu.reciprocal %70 {approx = true} : vector<8x1xf32> -> vector<8x1xf32>
    %72 = vector.broadcast %71 : vector<8x1xf32> to vector<8x8xf32>
    %73 = arith.mulf %68, %72 : vector<8x8xf32>
    %cst_36 = arith.constant dense<0.000000e+00> : vector<8x64xf32>
    %74 = tpu.matmul %73, %56, %cst_36 {dimension_numbers = #tpu.dot_dimension_numbers<[1], [0], [0], [1], [0, 0, 1, 1], [], []>} : vector<8x8xf32>, vector<8x64xf32>, vector<8x64xf32> -> vector<8x64xf32>
    %75 = vector.extract_strided_slice %7 {offsets = [0, 192], sizes = [8, 64], strides = [1, 1]} : vector<8x256xf32> to vector<8x64xf32>
    %76 = vector.extract_strided_slice %9 {offsets = [0, 192], sizes = [8, 64], strides = [1, 1]} : vector<8x256xf32> to vector<8x64xf32>
    %77 = vector.extract_strided_slice %11 {offsets = [0, 192], sizes = [8, 64], strides = [1, 1]} : vector<8x256xf32> to vector<8x64xf32>
    %cst_37 = arith.constant dense<0.000000e+00> : vector<8x8xf32>
    %78 = tpu.matmul %75, %76, %cst_37 {dimension_numbers = #tpu.dot_dimension_numbers<[1], [1], [0], [0], [0, 0, 1, 0], [], []>} : vector<8x64xf32>, vector<8x64xf32>, vector<8x8xf32> -> vector<8x8xf32>
    %cst_38 = arith.constant 0.000000e+00 : f32
    %79 = vector.broadcast %cst_38 : f32 to vector<8x8xf32>
    %80 = arith.cmpf oeq, %5, %79 : vector<8x8xf32>
    %cst_39 = arith.constant -1.000000e+20 : f32
    %81 = vector.broadcast %cst_39 : f32 to vector<8x8xf32>
    %82 = arith.select %80, %81, %78 : vector<8x8xi1>, vector<8x8xf32>
    %cst_40 = arith.constant 6.250000e-02 : f32
    %83 = vector.broadcast %cst_40 : f32 to vector<8x8xf32>
    %84 = arith.mulf %82, %83 : vector<8x8xf32>
    %cst_41 = arith.constant dense<0xFF800000> : vector<8xf32>
    %85 = vector.multi_reduction <maximumf>, %84, %cst_41 [1] : vector<8x8xf32> to vector<8xf32>
    %86 = vector.shape_cast %85 : vector<8xf32> to vector<8x1xf32>
    %87 = vector.broadcast %86 : vector<8x1xf32> to vector<8x8xf32>
    %88 = arith.subf %84, %87 : vector<8x8xf32>
    %89 = math.exp %88 : vector<8x8xf32>
    %cst_42 = arith.constant dense<0.000000e+00> : vector<8xf32>
    %90 = vector.multi_reduction <add>, %89, %cst_42 [1] : vector<8x8xf32> to vector<8xf32>
    %91 = vector.shape_cast %90 : vector<8xf32> to vector<8x1xf32>
    %92 = tpu.reciprocal %91 {approx = true} : vector<8x1xf32> -> vector<8x1xf32>
    %93 = vector.broadcast %92 : vector<8x1xf32> to vector<8x8xf32>
    %94 = arith.mulf %89, %93 : vector<8x8xf32>
    %cst_43 = arith.constant dense<0.000000e+00> : vector<8x64xf32>
    %95 = tpu.matmul %94, %77, %cst_43 {dimension_numbers = #tpu.dot_dimension_numbers<[1], [0], [0], [1], [0, 0, 1, 1], [], []>} : vector<8x8xf32>, vector<8x64xf32>, vector<8x64xf32> -> vector<8x64xf32>
    %96 = tpu.concatenate %32, %53, %74, %95 in 1 : vector<8x64xf32>, vector<8x64xf32>, vector<8x64xf32>, vector<8x64xf32> -> vector<8x256xf32>
    %c0_44 = arith.constant 0 : index
    %c0_45 = arith.constant 0 : index
    %97 = vector.load %arg7[%c0_44, %c0_45] : memref<256x256xf32, #tpu.memory_space<vmem>>, vector<256x256xf32>
    %cst_46 = arith.constant dense<0.000000e+00> : vector<8x256xf32>
    %98 = tpu.matmul %96, %97, %cst_46 {dimension_numbers = #tpu.dot_dimension_numbers<[1], [0], [0], [1], [0, 0, 1, 1], [], []>} : vector<8x256xf32>, vector<256x256xf32>, vector<8x256xf32> -> vector<8x256xf32>
    %c0_47 = arith.constant 0 : index
    %c0_48 = arith.constant 0 : index
    %99 = vector.load %arg8[%c0_47, %c0_48] : memref<1x256xf32, #tpu.memory_space<vmem>>, vector<1x256xf32>
    %100 = vector.broadcast %99 : vector<1x256xf32> to vector<8x256xf32>
    %101 = arith.addf %98, %100 : vector<8x256xf32>
    %102 = arith.addf %101, %1 : vector<8x256xf32>
    %cst_49 = arith.constant dense<0.000000e+00> : vector<8xf32>
    %103 = vector.multi_reduction <add>, %102, %cst_49 [1] : vector<8x256xf32> to vector<8xf32>
    %104 = vector.shape_cast %103 : vector<8xf32> to vector<8x1xf32>
    %cst_50 = arith.constant 2.560000e+02 : f32
    %105 = vector.broadcast %cst_50 : f32 to vector<8x1xf32>
    %106 = arith.divf %104, %105 : vector<8x1xf32>
    %107 = vector.broadcast %106 : vector<8x1xf32> to vector<8x256xf32>
    %108 = arith.subf %102, %107 : vector<8x256xf32>
    %109 = arith.mulf %108, %108 : vector<8x256xf32>
    %cst_51 = arith.constant dense<0.000000e+00> : vector<8xf32>
    %110 = vector.multi_reduction <add>, %109, %cst_51 [1] : vector<8x256xf32> to vector<8xf32>
    %111 = vector.shape_cast %110 : vector<8xf32> to vector<8x1xf32>
    %cst_52 = arith.constant 2.560000e+02 : f32
    %112 = vector.broadcast %cst_52 : f32 to vector<8x1xf32>
    %113 = arith.divf %111, %112 : vector<8x1xf32>
    %114 = vector.broadcast %106 : vector<8x1xf32> to vector<8x256xf32>
    %115 = arith.subf %102, %114 : vector<8x256xf32>
    %cst_53 = arith.constant 9.99999974E-6 : f32
    %116 = vector.broadcast %cst_53 : f32 to vector<8x1xf32>
    %117 = arith.addf %113, %116 : vector<8x1xf32>
    %118 = math.rsqrt %117 : vector<8x1xf32>
    %119 = vector.broadcast %118 : vector<8x1xf32> to vector<8x256xf32>
    %120 = arith.mulf %115, %119 : vector<8x256xf32>
    %c0_54 = arith.constant 0 : index
    %c0_55 = arith.constant 0 : index
    %121 = vector.load %arg9[%c0_54, %c0_55] : memref<1x256xf32, #tpu.memory_space<vmem>>, vector<1x256xf32>
    %122 = vector.broadcast %121 : vector<1x256xf32> to vector<8x256xf32>
    %123 = arith.mulf %120, %122 : vector<8x256xf32>
    %c0_56 = arith.constant 0 : index
    %c0_57 = arith.constant 0 : index
    %124 = vector.load %arg10[%c0_56, %c0_57] : memref<1x256xf32, #tpu.memory_space<vmem>>, vector<1x256xf32>
    %125 = vector.broadcast %124 : vector<1x256xf32> to vector<8x256xf32>
    %126 = arith.addf %123, %125 : vector<8x256xf32>
    %c0_58 = arith.constant 0 : index
    %c0_59 = arith.constant 0 : index
    %c0_60 = arith.constant 0 : index
    %127 = vector.load %arg11[%c0_58, %c0_59, %c0_60] : memref<1x8x256xf32, #tpu.memory_space<vmem>>, vector<1x8x256xf32>
    %128 = vector.shape_cast %127 : vector<1x8x256xf32> to vector<8x256xf32>
    %129 = vector.shape_cast %126 : vector<8x256xf32> to vector<1x8x256xf32>
    tpu.vector_store %arg11[%c0_58, %c0_59, %c0_60], %129 {strides = array<i32>} : memref<1x8x256xf32, #tpu.memory_space<vmem>>, vector<1x8x256xf32>,
    return
  }
  func.func @transform_0(%arg0: i32) -> (i32, i32, i32) {
    %c0_i32 = arith.constant 0 : i32
    %c0_i32_0 = arith.constant 0 : i32
    %c0_i32_1 = arith.constant 0 : i32
    return %arg0, %c0_i32, %c0_i32_0 : i32, i32, i32
  }
  func.func @transform_1(%arg0: i32) -> (i32, i32, i32) {
    %c0_i32 = arith.constant 0 : i32
    %c0_i32_0 = arith.constant 0 : i32
    %c0_i32_1 = arith.constant 0 : i32
    return %arg0, %c0_i32, %c0_i32_0 : i32, i32, i32
  }
  func.func @transform_2(%arg0: i32) -> (i32, i32, i32) {
    %c0_i32 = arith.constant 0 : i32
    %c0_i32_0 = arith.constant 0 : i32
    %c0_i32_1 = arith.constant 0 : i32
    return %arg0, %c0_i32, %c0_i32_0 : i32, i32, i32
  }
  func.func @transform_3(%arg0: i32) -> (i32, i32) {
    %c0_i32 = arith.constant 0 : i32
    %c0_i32_0 = arith.constant 0 : i32
    %c0_i32_1 = arith.constant 0 : i32
    return %c0_i32, %c0_i32_0 : i32, i32
  }
  func.func @transform_4(%arg0: i32) -> (i32, i32) {
    %c0_i32 = arith.constant 0 : i32
    %c0_i32_0 = arith.constant 0 : i32
    %c0_i32_1 = arith.constant 0 : i32
    return %c0_i32, %c0_i32_0 : i32, i32
  }
  func.func @transform_5(%arg0: i32) -> (i32, i32) {
    %c0_i32 = arith.constant 0 : i32
    %c0_i32_0 = arith.constant 0 : i32
    %c0_i32_1 = arith.constant 0 : i32
    return %c0_i32, %c0_i32_0 : i32, i32
  }
  func.func @transform_6(%arg0: i32) -> (i32, i32) {
    %c0_i32 = arith.constant 0 : i32
    %c0_i32_0 = arith.constant 0 : i32
    %c0_i32_1 = arith.constant 0 : i32
    return %c0_i32, %c0_i32_0 : i32, i32
  }
  func.func @transform_7(%arg0: i32) -> (i32, i32) {
    %c0_i32 = arith.constant 0 : i32
    %c0_i32_0 = arith.constant 0 : i32
    %c0_i32_1 = arith.constant 0 : i32
    return %c0_i32, %c0_i32_0 : i32, i32
  }
  func.func @transform_8(%arg0: i32) -> (i32, i32) {
    %c0_i32 = arith.constant 0 : i32
    %c0_i32_0 = arith.constant 0 : i32
    %c0_i32_1 = arith.constant 0 : i32
    return %c0_i32, %c0_i32_0 : i32, i32
  }
  func.func @transform_9(%arg0: i32) -> (i32, i32) {
    %c0_i32 = arith.constant 0 : i32
    %c0_i32_0 = arith.constant 0 : i32
    %c0_i32_1 = arith.constant 0 : i32
    return %c0_i32, %c0_i32_0 : i32, i32
  }
  func.func @transform_10(%arg0: i32) -> (i32, i32, i32) {
    %c0_i32 = arith.constant 0 : i32
    %c0_i32_0 = arith.constant 0 : i32
    %c0_i32_1 = arith.constant 0 : i32
    return %arg0, %c0_i32, %c0_i32_0 : i32, i32, i32
  }
}

module attributes {stable_mosaic.version = 11 : i64} {
  func.func @_proj_kernel(%arg0: memref<16x256xf32, #tpu.memory_space<vmem>>, %arg1: memref<256x128xf32, #tpu.memory_space<vmem>>, %arg2: memref<1x128xf32, #tpu.memory_space<vmem>>, %arg3: memref<16x128xf32, #tpu.memory_space<vmem>>) attributes {dimension_semantics = [], scalar_prefetch = 0 : i64, scratch_operands = 0 : i64, tpu.core_type = #tpu.core_type<tc>} {
    %c0 = arith.constant 0 : index
    %c0_0 = arith.constant 0 : index
    %0 = vector.load %arg0[%c0, %c0_0] : memref<16x256xf32, #tpu.memory_space<vmem>>, vector<16x256xf32>
    %c0_1 = arith.constant 0 : index
    %c0_2 = arith.constant 0 : index
    %1 = vector.load %arg1[%c0_1, %c0_2] : memref<256x128xf32, #tpu.memory_space<vmem>>, vector<256x128xf32>
    %cst = arith.constant dense<0.000000e+00> : vector<16x128xf32>
    %2 = tpu.matmul %0, %1, %cst {dimension_numbers = #tpu.dot_dimension_numbers<[1], [0], [0], [1], [0, 0, 1, 1], [], []>} : vector<16x256xf32>, vector<256x128xf32>, vector<16x128xf32> -> vector<16x128xf32>
    %c0_3 = arith.constant 0 : index
    %c0_4 = arith.constant 0 : index
    %3 = vector.load %arg2[%c0_3, %c0_4] : memref<1x128xf32, #tpu.memory_space<vmem>>, vector<1x128xf32>
    %4 = vector.broadcast %3 : vector<1x128xf32> to vector<16x128xf32>
    %5 = arith.addf %2, %4 : vector<16x128xf32>
    %c0_5 = arith.constant 0 : index
    %c0_6 = arith.constant 0 : index
    %6 = vector.load %arg3[%c0_5, %c0_6] : memref<16x128xf32, #tpu.memory_space<vmem>>, vector<16x128xf32>
    tpu.vector_store %arg3[%c0_5, %c0_6], %5 {strides = array<i32>} : memref<16x128xf32, #tpu.memory_space<vmem>>, vector<16x128xf32>,
    return
  }
}

</mosaic_0001>

<bundles_post_ra>
// kernel: transformer_forward.17
= control target key start
LH: loop header
LB: loop body
LE: loop exit
PB: predicated region body
PF: predicated region fallthrough
CT: control target
= control target key end

     0   :  { %s1294_s24 = smov 0   ;;  %s2140_s0 = inlined_call_operand.vmem [shape: f32[2,8,256], index: 0, kind: input, shape index: {}]   ;;  %s2141_s1 = inlined_call_operand.vmem [shape: f32[256,512], index: 1, kind: input, shape index: {}]   ;;  %s2142_s2 = inlined_call_operand.vmem [shape: f32[1,512], index: 2, kind: input, shape index: {}]   ;;  %s2143_s3 = inlined_call_operand.vmem [shape: f32[512,256], index: 3, kind: input, shape index: {}]   ;;  %s2144_s4 = inlined_call_operand.vmem [shape: f32[1,256], index: 4, kind: input, shape index: {}]   ;;  %s2145_s5 = inlined_call_operand.vmem [shape: f32[1,256], index: 5, kind: input, shape index: {}]   ;;  %s2146_s6 = inlined_call_operand.vmem [shape: f32[1,256], index: 6, kind: input, shape index: {}]   ;;  %s2147_s7 = inlined_call_operand.vmem [shape: f32[2,8,256], index: 7, kind: output, shape index: {}]  }
   0x1 LB: > { %s963_s25 = sadd.s32 4294967295, %s1252_s24   ;;  %p967_p0 = scmp.ge.s32.totalorder %s1252_s24, 1  ;;  %s1252_s24 = sphi %s1294_s24, %s17_s24  }
   0x2   : > { %p237_p1 = scmp.lt.s32.totalorder %s1252_s24, 3 }
   0x4   : > { %p238_p2 = pnand %p967_p0, %p237_p1 }
   0x5   : > { %v282_v0 = vld [vmem:[%s2141_s1 + $0x8] sm:$0xff] (!%p238_p2)  ;;  %v281_v2 = vld [vmem:[%s2141_s1] sm:$0xff] (!%p238_p2)  ;;  %p269_p3 = scmp.lt.s32.totalorder (!%p238_p2), %s963_s25, 1 }
   0x6   : > { %241 = sbr.rel (%p238_p2) target bundleno = 888 (0x378), region = 48  ;;  %v286_v1 = vld [vmem:[%s2141_s1 + $0x28] sm:$0xff] (!%p238_p2)  ;;  %v285_v4 = vld [vmem:[%s2141_s1 + $0x20] sm:$0xff] (!%p238_p2) }
   0x7   : > { %v976_v3 = vpack.c.bf16 (!%p238_p2), %v286_v1, %v282_v0  ;;  %v290_v5 = vld [vmem:[%s2141_s1 + $0x48] sm:$0xff] (!%p238_p2)  ;;  %v978_v7 = vpack.c.bf16 (!%p238_p2), %v285_v4, %v281_v2  ;;  %v289_v9 = vld [vmem:[%s2141_s1 + $0x40] sm:$0xff] (!%p238_p2) }
   0x8   : > { %v294_v6 = vld [vmem:[%s2141_s1 + $0x68] sm:$0xff] (!%p238_p2)  ;;  %v293_v10 = vld [vmem:[%s2141_s1 + $0x60] sm:$0xff] (!%p238_p2) }
   0x9   : > { %v980_v8 = vpack.c.bf16 (!%p238_p2), %v294_v6, %v290_v5  ;;  %v298_v11 = vld [vmem:[%s2141_s1 + $0x88] sm:$0xff] (!%p238_p2)  ;;  %977 = vmatprep.subr.bf16.mxu1 (!%p238_p2), %v976_v3  ;;  %v982_v13 = vpack.c.bf16 (!%p238_p2), %v293_v10, %v289_v9  ;;  %v297_v15 = vld [vmem:[%s2141_s1 + $0x80] sm:$0xff] (!%p238_p2) }
   0xa   : > { %v302_v12 = vld [vmem:[%s2141_s1 + $0xa8] sm:$0xff] (!%p238_p2)  ;;  %979 = vmatpush1.bf16.msra.mxu1 (!%p238_p2), %v978_v7  ;;  %v301_v16 = vld [vmem:[%s2141_s1 + $0xa0] sm:$0xff] (!%p238_p2) }
   0xb   : > { %981 = vmatprep.subr.bf16.mxu1 (!%p238_p2), %v980_v8  ;;  %v984_v14 = vpack.c.bf16 (!%p238_p2), %v302_v12, %v298_v11  ;;  %v306_v17 = vld [vmem:[%s2141_s1 + $0xc8] sm:$0xff] (!%p238_p2)  ;;  %v986_v19 = vpack.c.bf16 (!%p238_p2), %v301_v16, %v297_v15  ;;  %v305_v21 = vld [vmem:[%s2141_s1 + $0xc0] sm:$0xff] (!%p238_p2) }
   0xc   : > { %v310_v18 = vld [vmem:[%s2141_s1 + $0xe8] sm:$0xff] (!%p238_p2)  ;;  %v309_v22 = vld [vmem:[%s2141_s1 + $0xe0] sm:$0xff] (!%p238_p2) }
   0xd   : > { %v988_v20 = vpack.c.bf16 %v310_v18, %v306_v17  ;;  %v314_v23 = vld [vmem:[%s2141_s1 + $0x108] sm:$0xff]  ;;  %s2149_s25 = smov (!%p269_p3, %s963_s25), 1  ;;  %v990_v25 = vpack.c.bf16 %v309_v22, %v305_v21  ;;  %v313_v27 = vld [vmem:[%s2141_s1 + $0x100] sm:$0xff]  ;;  %v579_v18 = vld [vmem:[%s2143_s3 + $0x10] sm:$0xff] }
   0xe   : > { %983 = vmatpush1.bf16.msra.mxu1 %v982_v13  ;;  %v318_v24 = vld [vmem:[%s2141_s1 + $0x128] sm:$0xff]  ;;  %v317_v28 = vld [vmem:[%s2141_s1 + $0x120] sm:$0xff]  ;;  %s974_s28 = sshll.u32 %s2149_s25, 4  ;;  %v580_v13 = vld [vmem:[%s2143_s3 + $0x18] sm:$0xff] }
   0xf   : > { %985 = vmatprep.subr.bf16.mxu1 %v984_v14  ;;  %v992_v26 = vpack.c.bf16 %v318_v24, %v314_v23  ;;  %v322_v29 = vld [vmem:[%s2141_s1 + $0x148] sm:$0xff]  ;;  %v994_v31 = vpack.c.bf16 %v317_v28, %v313_v27  ;;  %v321_v33 = vld [vmem:[%s2141_s1 + $0x140] sm:$0xff]  ;;  %s1392_s16 = scalar_lea.vmem %s2140_s0, %s974_s28  ;;  %v584_v22 = vld [vmem:[%s2143_s3 + $0x38] sm:$0xff]  ;;  %s278_s13 = scalar_lea.vmem %s2147_s7, %s974_s28 }
  0x10   : > { %v326_v30 = vld [vmem:[%s2141_s1 + $0x168] sm:$0xff]  ;;  %v325_v34 = vld [vmem:[%s2141_s1 + $0x160] sm:$0xff]  ;;  %v583_v24 = vld [vmem:[%s2143_s3 + $0x30] sm:$0xff] }
  0x11   : > { %v996_v32 = vpack.c.bf16 %v326_v30, %v322_v29  ;;  %v330_v35 = vld [vmem:[%s2141_s1 + $0x188] sm:$0xff]  ;;  %v998_v37 = vpack.c.bf16 %v325_v34, %v321_v33  ;;  %v329_v39 = vld [vmem:[%s2141_s1 + $0x180] sm:$0xff]  ;;  %v588_v28 = vld [vmem:[%s2143_s3 + $0x58] sm:$0xff] }
  0x12   : > { %987 = vmatpush1.bf16.msra.mxu1 %v986_v19  ;;  %v334_v36 = vld [vmem:[%s2141_s1 + $0x1a8] sm:$0xff]  ;;  %v333_v40 = vld [vmem:[%s2141_s1 + $0x1a0] sm:$0xff]  ;;  %v587_v34 = vld [vmem:[%s2143_s3 + $0x50] sm:$0xff] }
  0x13   : > { %989 = vmatprep.subr.bf16.mxu1 %v988_v20  ;;  %v1000_v38 = vpack.c.bf16 %v334_v36, %v330_v35  ;;  %v1401_v41 = vld [vmem:[%s1392_s16 + $0x8] sm:$0xff]  ;;  %v1002_v44 = vpack.c.bf16 %v333_v40, %v329_v39  ;;  %v337_v46 = vld [vmem:[%s2141_s1 + $0x1c0] sm:$0xff] }
  0x14   : > { %v338_v42 = vld [vmem:[%s2141_s1 + $0x1c8] sm:$0xff]  ;;  %495 = vmatprep.mubr.f32.mxu1 %v1401_v41  ;;  %v341_v47 = vld [vmem:[%s2141_s1 + $0x1e0] sm:$0xff] }
  0x15   : > { %v342_v43 = vld [vmem:[%s2141_s1 + $0x1e8] sm:$0xff]  ;;  %v1006_v50 = vpack.c.bf16 %v341_v47, %v337_v46  ;;  %v345_v52 = vld [vmem:[%s2141_s1 + $0x200] sm:$0xff]  ;;  %v591_v47 = vld [vmem:[%s2143_s3 + $0x70] sm:$0xff] }
  0x16   : > { %991 = vmatpush1.bf16.msra.mxu1 %v990_v25  ;;  %v1004_v45 = vpack.c.bf16 %v342_v43, %v338_v42  ;;  %v346_v48 = vld [vmem:[%s2141_s1 + $0x208] sm:$0xff]  ;;  %v349_v53 = vld [vmem:[%s2141_s1 + $0x220] sm:$0xff] }
  0x17   : > { %993 = vmatprep.subr.bf16.mxu1 %v992_v26  ;;  %v350_v49 = vld [vmem:[%s2141_s1 + $0x228] sm:$0xff]  ;;  %v1010_v56 = vpack.c.bf16 %v349_v53, %v345_v52  ;;  %v353_v58 = vld [vmem:[%s2141_s1 + $0x240] sm:$0xff] }
  0x18   : > { %v1008_v51 = vpack.c.bf16 %v350_v49, %v346_v48  ;;  %v354_v54 = vld [vmem:[%s2141_s1 + $0x248] sm:$0xff]  ;;  %v357_v59 = vld [vmem:[%s2141_s1 + $0x260] sm:$0xff] }
  0x19   : > { %v358_v55 = vld [vmem:[%s2141_s1 + $0x268] sm:$0xff]  ;;  %v1014_v62 = vpack.c.bf16 %v357_v59, %v353_v58  ;;  %v361_v0 = vld [vmem:[%s2141_s1 + $0x280] sm:$0xff]  ;;  %v595_v59 = vld [vmem:[%s2143_s3 + $0x90] sm:$0xff] }
  0x1a   : > { %995 = vmatpush1.bf16.msra.mxu1 %v994_v31  ;;  %v1012_v57 = vpack.c.bf16 %v358_v55, %v354_v54  ;;  %v362_v60 = vld [vmem:[%s2141_s1 + $0x288] sm:$0xff]  ;;  %v365_v1 = vld [vmem:[%s2141_s1 + $0x2a0] sm:$0xff] }
  0x1b   : > { %997 = vmatprep.subr.bf16.mxu1 %v996_v32  ;;  %v366_v61 = vld [vmem:[%s2141_s1 + $0x2a8] sm:$0xff]  ;;  %v1018_v4 = vpack.c.bf16 %v365_v1, %v361_v0  ;;  %v369_v6 = vld [vmem:[%s2141_s1 + $0x2c0] sm:$0xff]  ;;  %v284_v0 = vld [vmem:[%s2141_s1 + $0x18] sm:$0xff] }
  0x1c   : > { %v1016_v63 = vpack.c.bf16 %v366_v61, %v362_v60  ;;  %v370_v2 = vld [vmem:[%s2141_s1 + $0x2c8] sm:$0xff]  ;;  %v373_v7 = vld [vmem:[%s2141_s1 + $0x2e0] sm:$0xff]  ;;  %v288_v1 = vld [vmem:[%s2141_s1 + $0x38] sm:$0xff] }
  0x1d   : > { %v374_v3 = vld [vmem:[%s2141_s1 + $0x2e8] sm:$0xff]  ;;  %v377_v10 = vld [vmem:[%s2141_s1 + $0x300] sm:$0xff]  ;;  %v1022_v14 = vpack.c.bf16 %v373_v7, %v369_v6  ;;  %v599_v6 = vld [vmem:[%s2143_s3 + $0xb0] sm:$0xff]  ;;  %v1040_v7 = vpack.c.bf16 %v288_v1, %v284_v0 }
  0x1e   : > { %999 = vmatpush1.bf16.msra.mxu1 %v998_v37  ;;  %v1020_v5 = vpack.c.bf16 %v374_v3, %v370_v2  ;;  %v378_v8 = vld [vmem:[%s2141_s1 + $0x308] sm:$0xff]  ;;  %v381_v11 = vld [vmem:[%s2141_s1 + $0x320] sm:$0xff] }
  0x1f   : > { %1001 = vmatprep.subr.bf16.mxu1 %v1000_v38  ;;  %v382_v9 = vld [vmem:[%s2141_s1 + $0x328] sm:$0xff]  ;;  %v577_v17 = vld [vmem:[%s2143_s3] sm:$0xff]  ;;  %v1026_v30 = vpack.c.bf16 %v381_v11, %v377_v10  ;;  %v592_v38 = vld [vmem:[%s2143_s3 + $0x78] sm:$0xff] }
  0x20   : > { %v578_v12 = vld [vmem:[%s2143_s3 + $0x8] sm:$0xff]  ;;  %v1024_v20 = vpack.c.bf16 %v382_v9, %v378_v8  ;;  %v1106_v21 = vpack.c.bf16 %v579_v18, %v577_v17  ;;  %v581_v23 = vld [vmem:[%s2143_s3 + $0x20] sm:$0xff]  ;;  %v283_v8 = vld [vmem:[%s2141_s1 + $0x10] sm:$0xff] }
  0x21   : > { %v386_v15 = vld [vmem:[%s2141_s1 + $0x348] sm:$0xff]  ;;  %v1104_v16 = vpack.c.bf16 %v580_v13, %v578_v12  ;;  %v1110_v29 = vpack.c.bf16 %v583_v24, %v581_v23  ;;  %v385_v31 = vld [vmem:[%s2141_s1 + $0x340] sm:$0xff]  ;;  %v287_v9 = vld [vmem:[%s2141_s1 + $0x30] sm:$0xff] }
  0x22   : > { %1003 = vmatpush1.bf16.msra.mxu1 %v1002_v44  ;;  %v582_v19 = vld [vmem:[%s2143_s3 + $0x28] sm:$0xff]  ;;  %v585_v33 = vld [vmem:[%s2143_s3 + $0x40] sm:$0xff]  ;;  %v292_v10 = vld [vmem:[%s2141_s1 + $0x58] sm:$0xff] }
  0x23   : > { %1005 = vmatprep.subr.bf16.mxu1 %v1004_v45  ;;  %v390_v25 = vld [vmem:[%s2141_s1 + $0x368] sm:$0xff]  ;;  %1105 = vmatprep.subr.bf16.mxu0 %v1104_v16  ;;  %v1108_v26 = vpack.c.bf16 %v584_v22, %v582_v19  ;;  %v389_v36 = vld [vmem:[%s2141_s1 + $0x360] sm:$0xff]  ;;  %v1114_v42 = vpack.c.bf16 %v587_v34, %v585_v33  ;;  %v296_v11 = vld [vmem:[%s2141_s1 + $0x78] sm:$0xff]  ;;  %v1042_v16 = vpack.c.bf16 %v287_v9, %v283_v8 }
  0x24   : > { %v586_v27 = vld [vmem:[%s2143_s3 + $0x48] sm:$0xff]  ;;  %1107 = vmatpush1.bf16.msra.mxu0 %v1106_v21  ;;  %v1028_v35 = vpack.c.bf16 %v390_v25, %v386_v15  ;;  %v1030_v43 = vpack.c.bf16 %v389_v36, %v385_v31  ;;  %v393_v44 = vld [vmem:[%s2141_s1 + $0x380] sm:$0xff]  ;;  %v604_v13 = vld [vmem:[%s2143_s3 + $0xd8] sm:$0xff] }
  0x25   : > { %1109 = vmatprep.subr.bf16.mxu0 %v1108_v26  ;;  %v1112_v32 = vpack.c.bf16 %v588_v28, %v586_v27  ;;  %v590_v37 = vld [vmem:[%s2143_s3 + $0x68] sm:$0xff]  ;;  %v589_v46 = vld [vmem:[%s2143_s3 + $0x60] sm:$0xff]  ;;  %v291_v17 = vld [vmem:[%s2141_s1 + $0x50] sm:$0xff] }
  0x26   : > { %1007 = vmatpush1.bf16.msra.mxu1 %v1006_v50  ;;  %v394_v39 = vld [vmem:[%s2141_s1 + $0x388] sm:$0xff]  ;;  %v1116_v45 = vpack.c.bf16 %v592_v38, %v590_v37  ;;  %v397_v49 = vld [vmem:[%s2141_s1 + $0x3a0] sm:$0xff]  ;;  %v1118_v54 = vpack.c.bf16 %v591_v47, %v589_v46  ;;  %v603_v19 = vld [vmem:[%s2143_s3 + $0xd0] sm:$0xff] }
  0x27   : > { %1009 = vmatprep.subr.bf16.mxu1 %v1008_v51  ;;  %v398_v40 = vld [vmem:[%s2141_s1 + $0x3a8] sm:$0xff]  ;;  %v596_v51 = vld [vmem:[%s2143_s3 + $0x98] sm:$0xff]  ;;  %v1034_v55 = vpack.c.bf16 %v397_v49, %v393_v44  ;;  %v593_v58 = vld [vmem:[%s2143_s3 + $0x80] sm:$0xff] }
  0x28   : > { %1111 = vmatpush1.bf16.msra.mxu0 %v1110_v29  ;;  %v1032_v48 = vpack.c.bf16 %v398_v40, %v394_v39  ;;  %v594_v50 = vld [vmem:[%s2143_s3 + $0x88] sm:$0xff]  ;;  %v405_v61 = vld [vmem:[%s2141_s1 + $0x3e0] sm:$0xff]  ;;  %v1122_v2 = vpack.c.bf16 %v595_v59, %v593_v58  ;;  %v295_v21 = vld [vmem:[%s2141_s1 + $0x70] sm:$0xff] }
  0x29   : > { %1113 = vmatprep.subr.bf16.mxu0 %v1112_v32  ;;  %v402_v52 = vld [vmem:[%s2141_s1 + $0x3c8] sm:$0xff]  ;;  %v601_v18 = vld [vmem:[%s2143_s3 + $0xc0] sm:$0xff]  ;;  %v608_v24 = vld [vmem:[%s2143_s3 + $0xf8] sm:$0xff]  ;;  %v1046_v28 = vpack.c.bf16 %v295_v21, %v291_v17 }
  0x2a   : > { %1011 = vmatpush1.bf16.msra.mxu1 %v1010_v56  ;;  %v406_v53 = vld [vmem:[%s2141_s1 + $0x3e8] sm:$0xff]  ;;  %v401_v56 = vld [vmem:[%s2141_s1 + $0x3c0] sm:$0xff]  ;;  %v300_v25 = vld [vmem:[%s2141_s1 + $0x98] sm:$0xff]  ;;  %v1130_v27 = vpack.c.bf16 %v603_v19, %v601_v18 }
  0x2b   : > { %1013 = vmatprep.subr.bf16.mxu1 %v1012_v57  ;;  %v1120_v57 = vpack.c.bf16 %v596_v51, %v594_v50  ;;  %v1036_v60 = vpack.c.bf16 %v406_v53, %v402_v52  ;;  %v1038_v3 = vpack.c.bf16 %v405_v61, %v401_v56  ;;  %v602_v12 = vld [vmem:[%s2143_s3 + $0xc8] sm:$0xff]  ;;  %v304_v26 = vld [vmem:[%s2141_s1 + $0xb8] sm:$0xff]  ;;  %v299_v29 = vld [vmem:[%s2141_s1 + $0x90] sm:$0xff] }
  0x2c   : > { %1115 = vmatpush1.bf16.msra.mxu0 %v1114_v42  ;;  %v1128_v22 = vpack.c.bf16 %v604_v13, %v602_v12  ;;  %v606_v23 = vld [vmem:[%s2143_s3 + $0xe8] sm:$0xff]  ;;  %v605_v31 = vld [vmem:[%s2143_s3 + $0xe0] sm:$0xff]  ;;  %v607_v32 = vld [vmem:[%s2143_s3 + $0xf0] sm:$0xff]  ;;  %v1048_v33 = vpack.c.bf16 %v304_v26, %v300_v25 }
  0x2d   : > { %1117 = vmatprep.subr.bf16.mxu0 %v1116_v45  ;;  %v303_v34 = vld [vmem:[%s2141_s1 + $0xb0] sm:$0xff]  ;;  %v612_v36 = vld [vmem:[%s2143_s3 + $0x118] sm:$0xff]  ;;  %v1134_v39 = vpack.c.bf16 %v607_v32, %v605_v31  ;;  %v609_v44 = vld [vmem:[%s2143_s3 + $0x100] sm:$0xff] }
  0x2e   : > { %1015 = vmatpush1.bf16.msra.mxu1 %v1014_v62  ;;  %v598_v62 = vld [vmem:[%s2143_s3 + $0xa8] sm:$0xff]  ;;  %v308_v37 = vld [vmem:[%s2141_s1 + $0xd8] sm:$0xff]  ;;  %v1050_v40 = vpack.c.bf16 %v303_v34, %v299_v29  ;;  %v307_v42 = vld [vmem:[%s2141_s1 + $0xd0] sm:$0xff] }
  0x2f   : > { %1017 = vmatprep.subr.bf16.mxu1 %v1016_v63  ;;  %v600_v63 = vld [vmem:[%s2143_s3 + $0xb8] sm:$0xff]  ;;  %v611_v45 = vld [vmem:[%s2143_s3 + $0x110] sm:$0xff]  ;;  %v613_v56 = vld [vmem:[%s2143_s3 + $0x120] sm:$0xff] }
  0x30   : > { %1119 = vmatpush1.bf16.msra.mxu0 %v1118_v54  ;;  %v312_v38 = vld [vmem:[%s2141_s1 + $0xf8] sm:$0xff]  ;;  %v311_v47 = vld [vmem:[%s2141_s1 + $0xf0] sm:$0xff]  ;;  %v1138_v52 = vpack.c.bf16 %v611_v45, %v609_v44  ;;  %v622_v8 = vld [vmem:[%s2143_s3 + $0x168] sm:$0xff] }
  0x31   : > { %1121 = vmatprep.subr.bf16.mxu0 %v1120_v57  ;;  %v1052_v46 = vpack.c.bf16 %v312_v38, %v308_v37  ;;  %v616_v49 = vld [vmem:[%s2143_s3 + $0x138] sm:$0xff]  ;;  %v1054_v53 = vpack.c.bf16 %v311_v47, %v307_v42  ;;  %v315_v54 = vld [vmem:[%s2141_s1 + $0x110] sm:$0xff]  ;;  %v621_v17 = vld [vmem:[%s2143_s3 + $0x160] sm:$0xff] }
  0x32   : > { %1019 = vmatpush1.bf16.msra.mxu1 %v1018_v4  ;;  %v1124_v4 = vpack.c.bf16 %v600_v63, %v598_v62  ;;  %v316_v50 = vld [vmem:[%s2141_s1 + $0x118] sm:$0xff]  ;;  %v615_v57 = vld [vmem:[%s2143_s3 + $0x130] sm:$0xff]  ;;  %v626_v21 = vld [vmem:[%s2143_s3 + $0x188] sm:$0xff] }
  0x33   : > { %1021 = vmatprep.subr.bf16.mxu1 %v1020_v5  ;;  %v597_v5 = vld [vmem:[%s2143_s3 + $0xa0] sm:$0xff]  ;;  %v320_v51 = vld [vmem:[%s2141_s1 + $0x138] sm:$0xff]  ;;  %v319_v59 = vld [vmem:[%s2141_s1 + $0x130] sm:$0xff]  ;;  %v1142_v0 = vpack.c.bf16 %v615_v57, %v613_v56 }
  0x34   : > { %1123 = vmatpush1.bf16.msra.mxu0 %v1122_v2  ;;  %v1126_v15 = vpack.c.bf16 %v599_v6, %v597_v5  ;;  %v1056_v58 = vpack.c.bf16 %v320_v51, %v316_v50  ;;  %v620_v61 = vld [vmem:[%s2143_s3 + $0x158] sm:$0xff]  ;;  %v1058_v1 = vpack.c.bf16 %v319_v59, %v315_v54  ;;  %v323_v2 = vld [vmem:[%s2141_s1 + $0x150] sm:$0xff]  ;;  %v625_v29 = vld [vmem:[%s2143_s3 + $0x180] sm:$0xff] }
  0x35   : > { %1125 = vmatprep.subr.bf16.mxu0 %v1124_v4  ;;  %v324_v62 = vld [vmem:[%s2141_s1 + $0x158] sm:$0xff]  ;;  %v617_v4 = vld [vmem:[%s2143_s3 + $0x140] sm:$0xff]  ;;  %v619_v5 = vld [vmem:[%s2143_s3 + $0x150] sm:$0xff] }
  0x36   : > { %1023 = vmatpush1.bf16.msra.mxu1 %v1022_v14  ;;  %v1609_v14 = vld [vmem:[%s1392_s16] sm:$0xff]  ;;  %v328_v63 = vld [vmem:[%s2141_s1 + $0x178] sm:$0xff]  ;;  %v1146_v12 = vpack.c.bf16 %v619_v5, %v617_v4  ;;  %v623_v18 = vld [vmem:[%s2143_s3 + $0x170] sm:$0xff] }
  0x37   : > { %1025 = vmatprep.subr.bf16.mxu1 %v1024_v20  ;;  %v1044_v20 = vpack.c.bf16 %v296_v11, %v292_v10  ;;  %v1060_v6 = vpack.c.bf16 %v328_v63, %v324_v62  ;;  %v624_v9 = vld [vmem:[%s2143_s3 + $0x178] sm:$0xff]  ;;  %v1150_v25 = vpack.c.bf16 %v623_v18, %v621_v17  ;;  %v343_v32 = vld [vmem:[%s2141_s1 + $0x1f0] sm:$0xff]  ;;  %v629_v42 = vld [vmem:[%s2143_s3 + $0x1a0] sm:$0xff] }
  0x38   : > { %1127 = vmatpush1.bf16.msra.mxu0 %v1126_v15  ;;  %v332_v10 = vld [vmem:[%s2141_s1 + $0x198] sm:$0xff]  ;;  %v331_v15 = vld [vmem:[%s2141_s1 + $0x190] sm:$0xff] }
  0x39   : > { %1129 = vmatprep.subr.bf16.mxu0 %v1128_v22  ;;  %v336_v11 = vld [vmem:[%s2141_s1 + $0x1b8] sm:$0xff]  ;;  %v351_v45 = vld [vmem:[%s2141_s1 + $0x230] sm:$0xff] }
  0x3a   : > { %1027 = vmatpush1.bf16.msra.mxu1 %v1026_v30  ;;  %v1132_v30 = vpack.c.bf16 %v608_v24, %v606_v23  ;;  %v1064_v19 = vpack.c.bf16 %v336_v11, %v332_v10  ;;  %v628_v22 = vld [vmem:[%s2143_s3 + $0x198] sm:$0xff]  ;;  %v355_v54 = vld [vmem:[%s2141_s1 + $0x250] sm:$0xff] }
  0x3b   : > { %1029 = vmatprep.subr.bf16.mxu1 %v1028_v35  ;;  %v610_v35 = vld [vmem:[%s2143_s3 + $0x108] sm:$0xff]  ;;  %v340_v23 = vld [vmem:[%s2141_s1 + $0x1d8] sm:$0xff] }
  0x3c   : > { %1131 = vmatpush1.bf16.msra.mxu0 %v1130_v27  ;;  %v344_v24 = vld [vmem:[%s2141_s1 + $0x1f8] sm:$0xff]  ;;  %v339_v27 = vld [vmem:[%s2141_s1 + $0x1d0] sm:$0xff] }
  0x3d   : > { %1133 = vmatprep.subr.bf16.mxu0 %v1132_v30  ;;  %v627_v30 = vld [vmem:[%s2143_s3 + $0x190] sm:$0xff]  ;;  %v1068_v31 = vpack.c.bf16 %v344_v24, %v340_v23  ;;  %v632_v34 = vld [vmem:[%s2143_s3 + $0x1b8] sm:$0xff]  ;;  %v1070_v38 = vpack.c.bf16 %v343_v32, %v339_v27 }
  0x3e   : > { %1031 = vmatpush1.bf16.msra.mxu1 %v1030_v43  ;;  %v1136_v43 = vpack.c.bf16 %v612_v36, %v610_v35  ;;  %v348_v35 = vld [vmem:[%s2141_s1 + $0x218] sm:$0xff]  ;;  %v1154_v37 = vpack.c.bf16 %v627_v30, %v625_v29  ;;  %v403_v27 = vld [vmem:[%s2141_s1 + $0x3d0] sm:$0xff]  ;;  %v633_v30 = vld [vmem:[%s2143_s3 + $0x1c0] sm:$0xff] }
  0x3f   : > { %1033 = vmatprep.subr.bf16.mxu1 %v1032_v48  ;;  %v614_v48 = vld [vmem:[%s2143_s3 + $0x128] sm:$0xff]  ;;  %v352_v36 = vld [vmem:[%s2141_s1 + $0x238] sm:$0xff] }
  0x40   : > { %1135 = vmatpush1.bf16.msra.mxu0 %v1134_v39  ;;  %v347_v39 = vld [vmem:[%s2141_s1 + $0x210] sm:$0xff]  ;;  %v1072_v44 = vpack.c.bf16 %v352_v36, %v348_v35  ;;  %v636_v47 = vld [vmem:[%s2143_s3 + $0x1d8] sm:$0xff]  ;;  %v637_v36 = vld [vmem:[%s2143_s3 + $0x1e0] sm:$0xff] }
  0x41   : > { %1137 = vmatprep.subr.bf16.mxu0 %v1136_v43  ;;  %v631_v43 = vld [vmem:[%s2143_s3 + $0x1b0] sm:$0xff]  ;;  %v1074_v51 = vpack.c.bf16 %v351_v45, %v347_v39  ;;  %v364_v56 = vld [vmem:[%s2141_s1 + $0x298] sm:$0xff]  ;;  %v642_v39 = vld [vmem:[%s2143_s3 + $0x208] sm:$0xff] }
  0x42   : > { %1035 = vmatpush1.bf16.msra.mxu1 %v1034_v55  ;;  %v1140_v55 = vpack.c.bf16 %v616_v49, %v614_v48  ;;  %v356_v48 = vld [vmem:[%s2141_s1 + $0x258] sm:$0xff]  ;;  %v1158_v50 = vpack.c.bf16 %v631_v43, %v629_v42  ;;  %v411_v43 = vlaneseq }
  0x43   : > { %1037 = vmatprep.subr.bf16.mxu1 %v1036_v60  ;;  %v618_v60 = vld [vmem:[%s2143_s3 + $0x148] sm:$0xff]  ;;  %v360_v49 = vld [vmem:[%s2141_s1 + $0x278] sm:$0xff] }
  0x44   : > { %1139 = vmatpush1.bf16.msra.mxu0 %v1138_v52  ;;  %v368_v57 = vld [vmem:[%s2141_s1 + $0x2b8] sm:$0xff] }
  0x45   : > { %1141 = vmatprep.subr.bf16.mxu0 %v1140_v55  ;;  %v359_v55 = vld [vmem:[%s2141_s1 + $0x270] sm:$0xff]  ;;  %v1080_v59 = vpack.c.bf16 %v368_v57, %v364_v56  ;;  %v372_v62 = vld [vmem:[%s2141_s1 + $0x2d8] sm:$0xff]  ;;  %v646_v56 = vld [vmem:[%s2143_s3 + $0x228] sm:$0xff] }
  0x46   : > { %1039 = vmatpush1.bf16.msra.mxu1 %v1038_v3  ;;  %v1144_v3 = vpack.c.bf16 %v620_v61, %v618_v60  ;;  %v363_v60 = vld [vmem:[%s2141_s1 + $0x290] sm:$0xff]  ;;  %v376_v63 = vld [vmem:[%s2141_s1 + $0x2f8] sm:$0xff] }
  0x47   : > { %1041 = vmatprep.subr.bf16.mxu1 %v1040_v7  ;;  %v327_v7 = vld [vmem:[%s2141_s1 + $0x170] sm:$0xff]  ;;  %v380_v4 = vld [vmem:[%s2141_s1 + $0x318] sm:$0xff] }
  0x48   : > { %1143 = vmatpush1.bf16.msra.mxu0 %v1142_v0  ;;  %v1062_v13 = vpack.c.bf16 %v327_v7, %v323_v2  ;;  %v367_v61 = vld [vmem:[%s2141_s1 + $0x2b0] sm:$0xff]  ;;  %v384_v5 = vld [vmem:[%s2141_s1 + $0x338] sm:$0xff] }
  0x49   : > { %496 = vmatmul.mubr.f32.vlgmr.msra.gmra.mrb[0].mxu1 %v1609_v14  ;;  %1145 = vmatprep.subr.bf16.mxu0 %v1144_v3  ;;  %v1082_v0 = vpack.c.bf16 %v367_v61, %v363_v60  ;;  %v371_v2 = vld [vmem:[%s2141_s1 + $0x2d0] sm:$0xff]  ;;  %v1088_v7 = vpack.c.bf16 %v384_v5, %v380_v4  ;;  %v388_v10 = vld [vmem:[%s2141_s1 + $0x358] sm:$0xff]  ;;  %v649_v4 = vld [vmem:[%s2143_s3 + $0x240] sm:$0xff] }
  0x4a   : > { %1043 = vmatpush1.bf16.msra.mxu1 %v1042_v16  ;;  %566 = vmatprep.mubr.f32.mxu1 %v1401_v41  ;;  %v1148_v16 = vpack.c.bf16 %v624_v9, %v622_v8  ;;  %v375_v3 = vld [vmem:[%s2141_s1 + $0x2f0] sm:$0xff]  ;;  %v392_v11 = vld [vmem:[%s2141_s1 + $0x378] sm:$0xff] }
  0x4b   : > { %1045 = vmatprep.subr.bf16.mxu1 %v1044_v20  ;;  %v335_v20 = vld [vmem:[%s2141_s1 + $0x1b0] sm:$0xff]  ;;  %v396_v17 = vld [vmem:[%s2141_s1 + $0x398] sm:$0xff] }
  0x4c   : > { %1147 = vmatpush1.bf16.msra.mxu0 %v1146_v12  ;;  %v1066_v26 = vpack.c.bf16 %v335_v20, %v331_v15  ;;  %v379_v8 = vld [vmem:[%s2141_s1 + $0x310] sm:$0xff]  ;;  %v400_v18 = vld [vmem:[%s2141_s1 + $0x3b8] sm:$0xff] }
  0x4d   : > { %1149 = vmatprep.subr.bf16.mxu0 %v1148_v16  ;;  %v383_v9 = vld [vmem:[%s2141_s1 + $0x330] sm:$0xff]  ;;  %v1096_v20 = vpack.c.bf16 %v400_v18, %v396_v17  ;;  %v404_v23 = vld [vmem:[%s2141_s1 + $0x3d8] sm:$0xff]  ;;  %v657_v17 = vld [vmem:[%s2143_s3 + $0x280] sm:$0xff] }
  0x4e   : > { %1047 = vmatpush1.bf16.msra.mxu1 %v1046_v28  ;;  %v1152_v28 = vpack.c.bf16 %v628_v22, %v626_v21  ;;  %v1090_v12 = vpack.c.bf16 %v383_v9, %v379_v8  ;;  %v387_v15 = vld [vmem:[%s2141_s1 + $0x350] sm:$0xff]  ;;  %v408_v24 = vld [vmem:[%s2141_s1 + $0x3f8] sm:$0xff] }
  0x4f   : > { %1049 = vmatprep.subr.bf16.mxu1 %v1048_v33  ;;  %v630_v33 = vld [vmem:[%s2143_s3 + $0x1a8] sm:$0xff]  ;;  %v391_v16 = vld [vmem:[%s2141_s1 + $0x370] sm:$0xff]  ;;  %v648_v57 = vld [vmem:[%s2143_s3 + $0x238] sm:$0xff] }
  0x50   : > { %1151 = vmatpush1.bf16.msra.mxu0 %v1150_v25  ;;  %v395_v21 = vld [vmem:[%s2141_s1 + $0x390] sm:$0xff]  ;;  %v1172_v61 = vpack.c.bf16 %v648_v57, %v646_v56 }
  0x51   : > { %1153 = vmatprep.subr.bf16.mxu0 %v1152_v28  ;;  %v399_v22 = vld [vmem:[%s2141_s1 + $0x3b0] sm:$0xff] }
  0x52   : > { %1051 = vmatpush1.bf16.msra.mxu1 %v1050_v40  ;;  %v1156_v40 = vpack.c.bf16 %v632_v34, %v630_v33  ;;  %v1098_v25 = vpack.c.bf16 %v399_v22, %v395_v21  ;;  %v407_v28 = vld [vmem:[%s2141_s1 + $0x3f0] sm:$0xff]  ;;  %v638_v33 = vld [vmem:[%s2143_s3 + $0x1e8] sm:$0xff]  ;;  %v640_v34 = vld [vmem:[%s2143_s3 + $0x1f8] sm:$0xff] }
  0x53   : > { %1053 = vmatprep.subr.bf16.mxu1 %v1052_v46  ;;  %v634_v46 = vld [vmem:[%s2143_s3 + $0x1c8] sm:$0xff]  ;;  %v1102_v29 = vpack.c.bf16 %v407_v28, %v403_v27  ;;  %v1164_v35 = vpack.c.bf16 %v640_v34, %v638_v33  ;;  %v651_v5 = vld [vmem:[%s2143_s3 + $0x250] sm:$0xff] }
  0x54   : > { %1155 = vmatpush1.bf16.msra.mxu0 %v1154_v37  ;;  %v1160_v52 = vpack.c.bf16 %v636_v47, %v634_v46  ;;  %v639_v37 = vld [vmem:[%s2143_s3 + $0x1f0] sm:$0xff]  ;;  %v1916_v46 = vld [vmem:[%s2142_s2] sm:$0xf]  ;;  %v1178_v8 = vpack.c.bf16 %v651_v5, %v649_v4 }
  0x55   : > { %1157 = vmatprep.subr.bf16.mxu0 %v1156_v40  ;;  %v644_v40 = vld [vmem:[%s2143_s3 + $0x218] sm:$0xff]  ;;  %v659_v18 = vld [vmem:[%s2143_s3 + $0x290] sm:$0xff] }
  0x56   : > { %1055 = vmatpush1.bf16.msra.mxu1 %v1054_v53  ;;  %v1076_v53 = vpack.c.bf16 %v360_v49, %v356_v48  ;;  %v1168_v42 = vpack.c.bf16 %v644_v40, %v642_v39  ;;  %v1186_v21 = vpack.c.bf16 %v659_v18, %v657_v17 }
  0x57   : > { %1057 = vmatprep.subr.bf16.mxu1 %v1056_v58  ;;  %v1078_v58 = vpack.c.bf16 %v359_v55, %v355_v54  ;;  %v643_v54 = vld [vmem:[%s2143_s3 + $0x210] sm:$0xff] }
  0x58   : > { %1159 = vmatpush1.bf16.msra.mxu0 %v1158_v50 }
  0x59   : > { %1161 = vmatprep.subr.bf16.mxu0 %v1160_v52 }
  0x5a   : > { %1059 = vmatpush1.bf16.msra.mxu1 %v1058_v1  ;;  %v1084_v1 = vpack.c.bf16 %v376_v63, %v372_v62  ;;  %v645_v62 = vld [vmem:[%s2143_s3 + $0x220] sm:$0xff]  ;;  %v647_v63 = vld [vmem:[%s2143_s3 + $0x230] sm:$0xff] }
  0x5b   : > { %1061 = vmatprep.subr.bf16.mxu1 %v1060_v6  ;;  %v1086_v6 = vpack.c.bf16 %v375_v3, %v371_v2  ;;  %v1174_v2 = vpack.c.bf16 %v647_v63, %v645_v62 }
  0x5e   : > { %1063 = vmatpush1.bf16.msra.mxu1 %v1062_v13  ;;  %v1092_v13 = vpack.c.bf16 %v392_v11, %v388_v10  ;;  %v653_v10 = vld [vmem:[%s2143_s3 + $0x260] sm:$0xff]  ;;  %v655_v11 = vld [vmem:[%s2143_s3 + $0x270] sm:$0xff] }
  0x5f   : > { %1065 = vmatprep.subr.bf16.mxu1 %v1064_v19  ;;  %v1094_v19 = vpack.c.bf16 %v391_v16, %v387_v15  ;;  %v1182_v15 = vpack.c.bf16 %v655_v11, %v653_v10 }
  0x62   : > { %1067 = vmatpush1.bf16.msra.mxu1 %v1066_v26  ;;  %v1100_v26 = vpack.c.bf16 %v408_v24, %v404_v23  ;;  %v661_v23 = vld [vmem:[%s2143_s3 + $0x2a0] sm:$0xff]  ;;  %v663_v24 = vld [vmem:[%s2143_s3 + $0x2b0] sm:$0xff] }
  0x63   : > { %1069 = vmatprep.subr.bf16.mxu1 %v1068_v31  ;;  %v635_v31 = vld [vmem:[%s2143_s3 + $0x1d0] sm:$0xff]  ;;  %v1190_v27 = vpack.c.bf16 %v663_v24, %v661_v23  ;;  %v702_v23 = vld [vmem:[%s2143_s3 + $0x3e8] sm:$0xff]  ;;  %v704_v24 = vld [vmem:[%s2143_s3 + $0x3f8] sm:$0xff] }
  0x64   : > { %v1162_v32 = vpack.c.bf16 %v635_v31, %v633_v30  ;;  %v667_v30 = vld [vmem:[%s2143_s3 + $0x2d0] sm:$0xff]  ;;  %v670_v31 = vld [vmem:[%s2143_s3 + $0x2e8] sm:$0xff] }
  0x66   : > { %1071 = vmatpush1.bf16.msra.mxu1 %v1070_v38  ;;  %1163 = vmatpush1.bf16.msra.mxu0 %v1162_v32  ;;  %v1166_v38 = vpack.c.bf16 %v639_v37, %v637_v36  ;;  %v672_v32 = vld [vmem:[%s2143_s3 + $0x2f8] sm:$0xff]  ;;  %v671_v36 = vld [vmem:[%s2143_s3 + $0x2f0] sm:$0xff]  ;;  %v674_v37 = vld [vmem:[%s2143_s3 + $0x308] sm:$0xff] }
  0x67   : > { %1073 = vmatprep.subr.bf16.mxu1 %v1072_v44  ;;  %1165 = vmatprep.subr.bf16.mxu0 %v1164_v35  ;;  %v1908_v44 = vshrl.u32 %v411_v43, 7  ;;  %v1196_v34 = vpack.c.bf16 %v672_v32, %v670_v31  ;;  %v669_v35 = vld [vmem:[%s2143_s3 + $0x2e0] sm:$0xff]  ;;  %v675_v43 = vld [vmem:[%s2143_s3 + $0x310] sm:$0xff] }
  0x68   : > { %v1198_v39 = vpack.c.bf16 %v671_v36, %v669_v35 }
  0x69   : > { %v1911_v45 = vsub.s32 0, %v1908_v44  ;;  %v1919_v47 = vsub.s32 1, %v1908_v44 }
  0x6a   : > { %1075 = vmatpush1.bf16.msra.mxu1 %v1074_v51  ;;  %1167 = vmatpush1.bf16.msra.mxu0 %v1166_v38  ;;  %v676_v38 = vld [vmem:[%s2143_s3 + $0x318] sm:$0xff] }
  0x6b   : > { %1077 = vmatprep.subr.bf16.mxu1 %v1076_v53  ;;  %1169 = vmatprep.subr.bf16.mxu0 %v1168_v42  ;;  %v414_v48 = vrot.slane %v1916_v46, %v1911_v45  ;;  %v418_v49 = vrot.slane %v1916_v46, %v1919_v47  ;;  %v641_v53 = vld [vmem:[%s2143_s3 + $0x200] sm:$0xff]  ;;  %v1200_v40 = vpack.c.bf16 %v676_v38, %v674_v37 }
  0x6c   : > { %v1170_v60 = vpack.c.bf16 %v643_v54, %v641_v53  ;;  %v673_v42 = vld [vmem:[%s2143_s3 + $0x300] sm:$0xff]  ;;  %v679_v53 = vld [vmem:[%s2143_s3 + $0x330] sm:$0xff]  ;;  %v682_v54 = vld [vmem:[%s2143_s3 + $0x348] sm:$0xff] }
  0x6d   : > { %v705_v37 = vld [vmem:[%s2144_s4] sm:$0x3] }
  0x6e   : > { %1079 = vmatpush1.bf16.msra.mxu1 %v1078_v58  ;;  %v710_v38 = vrot.slane %v705_v37, %v1911_v45 }
  0x6f   : > { %1081 = vmatprep.subr.bf16.mxu1 %v1080_v59 }
  0x72   : > { %1083 = vmatpush1.bf16.msra.mxu1 %v1082_v0  ;;  %v650_v0 = vld [vmem:[%s2143_s3 + $0x248] sm:$0xff] }
  0x73   : > { %1085 = vmatprep.subr.bf16.mxu1 %v1084_v1  ;;  %v652_v1 = vld [vmem:[%s2143_s3 + $0x258] sm:$0xff] }
  0x74   : > { %v1176_v3 = vpack.c.bf16 %v652_v1, %v650_v0  ;;  %v685_v0 = vld [vmem:[%s2143_s3 + $0x360] sm:$0xff]  ;;  %v687_v1 = vld [vmem:[%s2143_s3 + $0x370] sm:$0xff] }
  0x75   : > { %v1214_v4 = vpack.c.bf16 %v687_v1, %v685_v0 }
  0x76   : > { %1087 = vmatpush1.bf16.msra.mxu1 %v1086_v6  ;;  %v654_v6 = vld [vmem:[%s2143_s3 + $0x268] sm:$0xff] }
  0x77   : > { %1089 = vmatprep.subr.bf16.mxu1 %v1088_v7  ;;  %v656_v7 = vld [vmem:[%s2143_s3 + $0x278] sm:$0xff] }
  0x78   : > { %v1180_v9 = vpack.c.bf16 %v656_v7, %v654_v6  ;;  %v689_v6 = vld [vmem:[%s2143_s3 + $0x380] sm:$0xff]  ;;  %v691_v7 = vld [vmem:[%s2143_s3 + $0x390] sm:$0xff] }
  0x79   : > { %v1218_v10 = vpack.c.bf16 %v691_v7, %v689_v6 }
  0x7a   : > { %1091 = vmatpush1.bf16.msra.mxu1 %v1090_v12  ;;  %v658_v12 = vld [vmem:[%s2143_s3 + $0x288] sm:$0xff] }
  0x7b   : > { %1093 = vmatprep.subr.bf16.mxu1 %v1092_v13  ;;  %v660_v13 = vld [vmem:[%s2143_s3 + $0x298] sm:$0xff] }
  0x7c   : > { %v1184_v16 = vpack.c.bf16 %v660_v13, %v658_v12  ;;  %v693_v12 = vld [vmem:[%s2143_s3 + $0x3a0] sm:$0xff]  ;;  %v695_v13 = vld [vmem:[%s2143_s3 + $0x3b0] sm:$0xff] }
  0x7d   : > { %v1222_v17 = vpack.c.bf16 %v695_v13, %v693_v12 }
  0x7e   : > { %1095 = vmatpush1.bf16.msra.mxu1 %v1094_v19  ;;  %v662_v19 = vld [vmem:[%s2143_s3 + $0x2a8] sm:$0xff] }
  0x7f   : > { %1097 = vmatprep.subr.bf16.mxu1 %v1096_v20  ;;  %v664_v20 = vld [vmem:[%s2143_s3 + $0x2b8] sm:$0xff] }
  0x80   : > { %v1188_v22 = vpack.c.bf16 %v664_v20, %v662_v19  ;;  %v421_v19 = vsub.s32 2, %v1908_v44  ;;  %v697_v20 = vld [vmem:[%s2143_s3 + $0x3c0] sm:$0xff] }
  0x82   : > { %1099 = vmatpush1.bf16.msra.mxu1 %v1098_v25  ;;  %v666_v25 = vld [vmem:[%s2143_s3 + $0x2c8] sm:$0xff] }
  0x83   : > { %1101 = vmatprep.subr.bf16.mxu1 %v1100_v26  ;;  %v668_v26 = vld [vmem:[%s2143_s3 + $0x2d8] sm:$0xff] }
  0x84   : > { %v1192_v28 = vpack.c.bf16 %v668_v26, %v666_v25  ;;  %v422_v26 = vrot.slane %v1916_v46, %v421_v19 }
  0x86   : > { %1103 = vmatpush1.bf16.msra.mxu1 %v1102_v29  ;;  %v665_v29 = vld [vmem:[%s2143_s3 + $0x2c0] sm:$0xff] }
  0x87   : > { %v1194_v33 = vpack.c.bf16 %v667_v30, %v665_v29 }
  0x89   : > { %567 = vmatmul.mubr.f32.vlgmr.msra.gmra.mrb[2].mxu1 %v1609_v14 }
 0x11c   : > { %v497_v50 = vpop.f32.mrb[0].mxu1 }
 0x11d   : > { %v498_v51 = vadd.f32 %v497_v50, %v414_v48  ;;  %v499_v52 = vpop.f32.mrb[1].mxu1  ;;  %v678_v48 = vld [vmem:[%s2143_s3 + $0x328] sm:$0xff]  ;;  %v1202_v50 = vpack.c.bf16 %v675_v43, %v673_v42 }
 0x11e   : > { %v500_v55 = vadd.f32 %v499_v52, %v418_v49  ;;  %v680_v49 = vld [vmem:[%s2143_s3 + $0x338] sm:$0xff]  ;;  %v677_v52 = vld [vmem:[%s2143_s3 + $0x320] sm:$0xff] }
 0x11f   : > { %v573_v58 = vmax.f32 %v498_v51, 0.0  ;;  %v1204_v51 = vpack.c.bf16 %v680_v49, %v678_v48  ;;  %v1206_v56 = vpack.c.bf16 %v679_v53, %v677_v52 }
 0x120   : > { %v574_v59 = vmax.f32 %v500_v55, 0.0  ;;  %v684_v55 = vld [vmem:[%s2143_s3 + $0x358] sm:$0xff] }
 0x121   : > { %v1208_v57 = vpack.c.bf16 %v684_v55, %v682_v54 }
 0x122   : > { %781 = vmatprep.mubr.f32.mxu0 %v574_v59  ;;  %v683_v59 = vld [vmem:[%s2143_s3 + $0x350] sm:$0xff] }
 0x123   : > { %782 = vmatmul.mubr.f32.vlgmr.msra.gmra.mrb[0].mxu0 %v573_v58  ;;  %v681_v58 = vld [vmem:[%s2143_s3 + $0x340] sm:$0xff] }
 0x124   : > { %1171 = vmatpush1.bf16.msra.mxu0 %v1170_v60  ;;  %v686_v60 = vld [vmem:[%s2143_s3 + $0x368] sm:$0xff]  ;;  %v1210_v62 = vpack.c.bf16 %v683_v59, %v681_v58 }
 0x125   : > { %1173 = vmatprep.subr.bf16.mxu0 %v1172_v61  ;;  %v688_v61 = vld [vmem:[%s2143_s3 + $0x378] sm:$0xff] }
 0x126   : > { %v1212_v63 = vpack.c.bf16 %v688_v61, %v686_v60 }
 0x128   : > { %1175 = vmatpush1.bf16.msra.mxu0 %v1174_v2  ;;  %v690_v2 = vld [vmem:[%s2143_s3 + $0x388] sm:$0xff] }
 0x129   : > { %1177 = vmatprep.subr.bf16.mxu0 %v1176_v3  ;;  %v692_v3 = vld [vmem:[%s2143_s3 + $0x398] sm:$0xff] }
 0x12a   : > { %v1216_v5 = vpack.c.bf16 %v692_v3, %v690_v2 }
 0x12c   : > { %1179 = vmatpush1.bf16.msra.mxu0 %v1178_v8  ;;  %v694_v8 = vld [vmem:[%s2143_s3 + $0x3a8] sm:$0xff] }
 0x12d   : > { %1181 = vmatprep.subr.bf16.mxu0 %v1180_v9  ;;  %v696_v9 = vld [vmem:[%s2143_s3 + $0x3b8] sm:$0xff] }
 0x12e   : > { %v1220_v11 = vpack.c.bf16 %v696_v9, %v694_v8 }
 0x130   : > { %1183 = vmatpush1.bf16.msra.mxu0 %v1182_v15  ;;  %v698_v15 = vld [vmem:[%s2143_s3 + $0x3c8] sm:$0xff] }
 0x131   : > { %1185 = vmatprep.subr.bf16.mxu0 %v1184_v16  ;;  %v700_v16 = vld [vmem:[%s2143_s3 + $0x3d8] sm:$0xff] }
 0x132   : > { %v1224_v18 = vpack.c.bf16 %v700_v16, %v698_v15 }
 0x134   : > { %1187 = vmatpush1.bf16.msra.mxu0 %v1186_v21  ;;  %v699_v21 = vld [vmem:[%s2143_s3 + $0x3d0] sm:$0xff] }
 0x135   : > { %1189 = vmatprep.subr.bf16.mxu0 %v1188_v22  ;;  %v425_v22 = vsub.s32 3, %v1908_v44  ;;  %v1226_v25 = vpack.c.bf16 %v699_v21, %v697_v20  ;;  %v703_v44 = vld [vmem:[%s2143_s3 + $0x3f0] sm:$0xff] }
 0x137   : > { %v426_v29 = vrot.slane %v1916_v46, %v425_v22  ;;  %v714_v46 = vrot.slane %v705_v37, %v1919_v47 }
 0x138   : > { %1191 = vmatpush1.bf16.msra.mxu0 %v1190_v27  ;;  %v1228_v27 = vpack.c.bf16 %v704_v24, %v702_v23 }
 0x139   : > { %1193 = vmatprep.subr.bf16.mxu0 %v1192_v28  ;;  %v701_v28 = vld [vmem:[%s2143_s3 + $0x3e0] sm:$0xff] }
 0x13a   : > { %v1230_v31 = vpack.c.bf16 %v703_v44, %v701_v28 }
 0x13c   : > { %1195 = vmatpush1.bf16.msra.mxu0 %v1194_v33 }
 0x13d   : > { %1197 = vmatprep.subr.bf16.mxu0 %v1196_v34 }
 0x140   : > { %1199 = vmatpush1.bf16.msra.mxu0 %v1198_v39 }
 0x141   : > { %1201 = vmatprep.subr.bf16.mxu0 %v1200_v40 }
 0x144   : > { %1203 = vmatpush1.bf16.msra.mxu0 %v1202_v50 }
 0x145   : > { %1205 = vmatprep.subr.bf16.mxu0 %v1204_v51 }
 0x148   : > { %1207 = vmatpush1.bf16.msra.mxu0 %v1206_v56 }
 0x149   : > { %1209 = vmatprep.subr.bf16.mxu0 %v1208_v57 }
 0x14c   : > { %1211 = vmatpush1.bf16.msra.mxu0 %v1210_v62 }
 0x14d   : > { %1213 = vmatprep.subr.bf16.mxu0 %v1212_v63 }
 0x150   : > { %1215 = vmatpush1.bf16.msra.mxu0 %v1214_v4 }
 0x151   : > { %1217 = vmatprep.subr.bf16.mxu0 %v1216_v5 }
 0x154   : > { %1219 = vmatpush1.bf16.msra.mxu0 %v1218_v10 }
 0x155   : > { %1221 = vmatprep.subr.bf16.mxu0 %v1220_v11 }
 0x158   : > { %1223 = vmatpush1.bf16.msra.mxu0 %v1222_v17 }
 0x159   : > { %1225 = vmatprep.subr.bf16.mxu0 %v1224_v18 }
 0x15c   : > { %v568_v30 = vpop.f32.mrb[2].mxu1  ;;  %1227 = vmatpush1.bf16.msra.mxu0 %v1226_v25 }
 0x15d   : > { %v569_v32 = vadd.f32 %v568_v30, %v422_v26  ;;  %v570_v33 = vpop.f32.mrb[3].mxu1  ;;  %1229 = vmatprep.subr.bf16.mxu0 %v1228_v27 }
 0x15e   : > { %v571_v34 = vadd.f32 %v570_v33, %v426_v29 }
 0x15f   : > { %v575_v36 = vmax.f32 %v569_v32, 0.0 }
 0x160   : > { %v576_v35 = vmax.f32 %v571_v34, 0.0  ;;  %1231 = vmatpush1.bf16.msra.mxu0 %v1230_v31 }
 0x162   : > { %852 = vmatprep.mubr.f32.mxu0 %v576_v35 }
 0x163   : > { %853 = vmatmul.mubr.f32.vlgmr.msra.gmra.mrb[0].mxu0 %v575_v36 }
 0x236   : > { %v854_v39 = vpop.f32.mrb[0].mxu0 }
 0x237   : > { %v1232_v40 = vadd.f32 %v854_v39, %v710_v38  ;;  %v856_v42 = vpop.f32.mrb[1].mxu0 }
 0x238   : > { %v1233_v43 = vadd.f32 %v856_v42, %v714_v46 }
 0x239   : > { %v859_v48 = vadd.f32 %v1232_v40, %v1609_v14  ;;  %v878_v14 = vld [vmem:[%s2145_s5] sm:$0x3] }
 0x23a   : > { %v860_v49 = vadd.f32 %v1233_v43, %v1401_v41  ;;  %v892_v41 = vld [vmem:[%s2146_s6] sm:$0x3]  ;;  %v883_v61 = vrot.slane %v878_v14, %v1911_v45  ;;  %v887_v62 = vrot.slane %v878_v14, %v1919_v47 }
 0x23b   : > { %v897_v0 = vrot.slane %v892_v41, %v1911_v45  ;;  %v901_v1 = vrot.slane %v892_v41, %v1919_v47 }
 0x23c   : > { %v861_v50 = vadd.f32 %v860_v49, %v859_v48 }
 0x23e   : > { %862 = vadd.xlane.f32.xlu0 %v861_v50 }
 0x2cb   : > { %v863_v51 = vpop.xlane.xlu0 %862 }
 0x2cc   : > { %v865_v52 = vmul.f32 0.00390625, %v863_v51 }
 0x2ce   : > { %v866_v53 = vsub.f32 %v859_v48, %v865_v52  ;;  %v867_v54 = vsub.f32 %v860_v49, %v865_v52 }
 0x2d0   : > { %v868_v55 = vmul.f32 %v866_v53, %v866_v53  ;;  %v869_v56 = vmul.f32 %v867_v54, %v867_v54 }
 0x2d2   : > { %v870_v57 = vadd.f32 %v869_v56, %v868_v55 }
 0x2d4   : > { %871 = vadd.xlane.f32.xlu0 %v870_v57 }
 0x361   : > { %v872_v58 = vpop.xlane.xlu0 %871 }
 0x362   : > { %v873_v59 = vmul.f32 0.00390625, %v872_v58 }
 0x364   : > { %v874_v60 = vadd.f32 1e-05, %v873_v59 }
 0x366   : > { %1244 = vrsqrt.f32 %v874_v60 }
 0x370   : > { %v1245_v63 = vpop.eup %1244 }
 0x371   : > { %v876_v2 = vmul.f32 %v1245_v63, %v866_v53  ;;  %v877_v3 = vmul.f32 %v1245_v63, %v867_v54 }
 0x373   : > { %v890_v4 = vmul.f32 %v883_v61, %v876_v2  ;;  %v891_v5 = vmul.f32 %v887_v62, %v877_v3 }
 0x375   : > { %v904_v6 = vadd.f32 %v897_v0, %v890_v4  ;;  %v905_v7 = vadd.f32 %v901_v1, %v891_v5 }
 0x377   : > { %906 = vst [vmem:[%s278_s13] sm:$0xff] %v904_v6  ;;  %907 = vst [vmem:[%s278_s13 + $0x8] sm:$0xff] %v905_v7 }
 0x378 PF: > { %s17_s24 = sadd.s32 1, %s1252_s24  }
 0x379   : > { %p14_p4 = scmp.ge.s32.totalorder %s17_s24, 4  }
 0x37b   :  { %16 = sbr.rel (!%p14_p4) target bundleno = 1 (0x1), region = 78 }

// kernel: transformer_forward.16
= control target key start
LH: loop header
LB: loop body
LE: loop exit
PB: predicated region body
PF: predicated region fallthrough
CT: control target
= control target key end

     0   :  { %s2196_s13 = smov 0   ;;  %s3117_s0 = inlined_call_operand.vmem [shape: f32[2,8,256], index: 0, kind: input, shape index: {}, may-alias: {0,1}]   ;;  %s3118_s1 = inlined_call_operand.vmem [shape: f32[2,8,256], index: 1, kind: input, shape index: {}, may-alias: {0,1}]   ;;  %s3119_s2 = inlined_call_operand.vmem [shape: f32[2,8,8], index: 2, kind: input, shape index: {}]   ;;  %s3120_s3 = inlined_call_operand.vmem [shape: f32[256,256], index: 3, kind: input, shape index: {}]   ;;  %s3121_s4 = inlined_call_operand.vmem [shape: f32[256,256], index: 4, kind: input, shape index: {}]   ;;  %s3122_s5 = inlined_call_operand.vmem [shape: f32[256,256], index: 5, kind: input, shape index: {}]   ;;  %s3123_s6 = inlined_call_operand.vmem [shape: f32[256,256], index: 6, kind: input, shape index: {}]   ;;  %s3124_s7 = inlined_call_operand.vmem [shape: f32[1,256], index: 7, kind: input, shape index: {}]   ;;  %s3125_s8 = inlined_call_operand.vmem [shape: f32[1,256], index: 8, kind: input, shape index: {}]   ;;  %s3126_s9 = inlined_call_operand.vmem [shape: f32[1,256], index: 9, kind: input, shape index: {}]   ;;  %s3127_s10 = inlined_call_operand.vmem [shape: f32[2,8,256], index: 10, kind: output, shape index: {}]  }
   0x1 LB: > { %s1755_s14 = sadd.s32 4294967295, %s2136_s13   ;;  %p1759_p0 = scmp.ge.s32.totalorder %s2136_s13, 1  ;;  %s2136_s13 = sphi %s2196_s13, %s20_s13  }
   0x2   : > { %p331_p1 = scmp.lt.s32.totalorder %s2136_s13, 3 }
   0x4   : > { %p332_p2 = pnand %p1759_p0, %p331_p1 }
   0x5   : > { %v538_v0 = vld [vmem:[%s3121_s4 + $0x8] sm:$0xff] (!%p332_p2)  ;;  %v540_v1 = vld [vmem:[%s3121_s4 + $0x18] sm:$0xff] (!%p332_p2)  ;;  %v537_v2 = vld [vmem:[%s3121_s4] sm:$0xff] (!%p332_p2)  ;;  %p2410_p3 = scmp.lt.s32.totalorder (!%p332_p2), %s1755_s14, 1  ;;  %vm2139_vm0 = vmmov (!%p332_p2), 0   ;;  %vm807_vm1 = vcmask (!%p332_p2), 523264  }
   0x6   : > { %335 = sbr.rel (%p332_p2) target bundleno = 2224 (0x8b0), region = 60  ;;  %v1904_v3 = vpack.c.bf16 (!%p332_p2), %v540_v1, %v538_v0  ;;  %v539_v4 = vld [vmem:[%s3121_s4 + $0x10] sm:$0xff] (!%p332_p2)  ;;  %v403_v5 = vld [vmem:[%s3120_s3 + $0x8] sm:$0xff] (!%p332_p2)  ;;  %v405_v6 = vld [vmem:[%s3120_s3 + $0x18] sm:$0xff] (!%p332_p2)  ;;  %s2140_s16 = smov (!%p332_p2), 64   ;;  %vm887_vm3 = vcmask (!%p332_p2), 64512  }
   0x7   : > { %v1906_v7 = vpack.c.bf16 (!%p332_p2), %v539_v4, %v537_v2  ;;  %v1840_v8 = vpack.c.bf16 (!%p332_p2), %v405_v6, %v403_v5  ;;  %v402_v9 = vld [vmem:[%s3120_s3] sm:$0xff] (!%p332_p2)  ;;  %v404_v10 = vld [vmem:[%s3120_s3 + $0x10] sm:$0xff] (!%p332_p2)  ;;  %v542_v11 = vld [vmem:[%s3121_s4 + $0x28] sm:$0xff] (!%p332_p2) }
   0x8   : > { %1905 = vmatprep.subr.bf16.mxu1 (!%p332_p2), %v1904_v3  ;;  %v1842_v12 = vpack.c.bf16 (!%p332_p2), %v404_v10, %v402_v9  ;;  %v544_v13 = vld [vmem:[%s3121_s4 + $0x38] sm:$0xff] (!%p332_p2)  ;;  %v541_v14 = vld [vmem:[%s3121_s4 + $0x20] sm:$0xff] (!%p332_p2)  ;;  %v543_v15 = vld [vmem:[%s3121_s4 + $0x30] sm:$0xff] (!%p332_p2) }
   0x9   : > { %1907 = vmatpush1.bf16.msra.mxu1 (!%p332_p2), %v1906_v7  ;;  %1841 = vmatprep.subr.bf16.mxu0 (!%p332_p2), %v1840_v8  ;;  %v1908_v16 = vpack.c.bf16 (!%p332_p2), %v544_v13, %v542_v11  ;;  %v1910_v17 = vpack.c.bf16 (!%p332_p2), %v543_v15, %v541_v14  ;;  %v407_v18 = vld [vmem:[%s3120_s3 + $0x28] sm:$0xff] (!%p332_p2)  ;;  %v409_v19 = vld [vmem:[%s3120_s3 + $0x38] sm:$0xff] (!%p332_p2)  ;;  %v406_v20 = vld [vmem:[%s3120_s3 + $0x20] sm:$0xff] (!%p332_p2) }
   0xa   : > { %1843 = vmatpush1.bf16.msra.mxu0 (!%p332_p2), %v1842_v12  ;;  %v1844_v21 = vpack.c.bf16 (!%p332_p2), %v409_v19, %v407_v18  ;;  %v408_v22 = vld [vmem:[%s3120_s3 + $0x30] sm:$0xff] (!%p332_p2)  ;;  %v546_v23 = vld [vmem:[%s3121_s4 + $0x48] sm:$0xff] (!%p332_p2)  ;;  %v548_v24 = vld [vmem:[%s3121_s4 + $0x58] sm:$0xff] (!%p332_p2) }
   0xb   : > { %1909 = vmatprep.subr.bf16.mxu1 (!%p332_p2), %v1908_v16  ;;  %v1846_v25 = vpack.c.bf16 (!%p332_p2), %v408_v22, %v406_v20  ;;  %v1912_v26 = vpack.c.bf16 (!%p332_p2), %v548_v24, %v546_v23  ;;  %v545_v27 = vld [vmem:[%s3121_s4 + $0x40] sm:$0xff] (!%p332_p2)  ;;  %v547_v28 = vld [vmem:[%s3121_s4 + $0x50] sm:$0xff] (!%p332_p2)  ;;  %v411_v29 = vld [vmem:[%s3120_s3 + $0x48] sm:$0xff] (!%p332_p2) }
   0xc   : > { %1845 = vmatprep.subr.bf16.mxu0 (!%p332_p2), %v1844_v21  ;;  %v413_v30 = vld [vmem:[%s3120_s3 + $0x58] sm:$0xff] (!%p332_p2)  ;;  %v410_v31 = vld [vmem:[%s3120_s3 + $0x40] sm:$0xff] (!%p332_p2)  ;;  %v412_v32 = vld [vmem:[%s3120_s3 + $0x50] sm:$0xff] (!%p332_p2)  ;;  %v1914_v33 = vpack.c.bf16 (!%p332_p2), %v547_v28, %v545_v27 }
   0xd   : > { %1911 = vmatpush1.bf16.msra.mxu1 %v1910_v17  ;;  %v1848_v34 = vpack.c.bf16 %v413_v30, %v411_v29  ;;  %v550_v35 = vld [vmem:[%s3121_s4 + $0x68] sm:$0xff]  ;;  %v552_v36 = vld [vmem:[%s3121_s4 + $0x78] sm:$0xff]  ;;  %v549_v37 = vld [vmem:[%s3121_s4 + $0x60] sm:$0xff]  ;;  %v1850_v38 = vpack.c.bf16 %v412_v32, %v410_v31  ;;  %s3130_s14 = smov (!%p2410_p3, %s1755_s14), 1 }
   0xe   : > { %1847 = vmatpush1.bf16.msra.mxu0 %v1846_v25  ;;  %1913 = vmatprep.subr.bf16.mxu1 %v1912_v26  ;;  %v1916_v39 = vpack.c.bf16 %v552_v36, %v550_v35  ;;  %v551_v40 = vld [vmem:[%s3121_s4 + $0x70] sm:$0xff]  ;;  %v415_v41 = vld [vmem:[%s3120_s3 + $0x68] sm:$0xff]  ;;  %v417_v42 = vld [vmem:[%s3120_s3 + $0x78] sm:$0xff]  ;;  %s2469_s22 = sshll.u32 %s3130_s14, 4  ;;  %s1764_s17 = sshll.u32 %s3130_s14, 3 }
   0xf   : > { %1849 = vmatprep.subr.bf16.mxu0 %v1848_v34  ;;  %v1852_v43 = vpack.c.bf16 %v417_v42, %v415_v41  ;;  %v414_v44 = vld [vmem:[%s3120_s3 + $0x60] sm:$0xff]  ;;  %v416_v45 = vld [vmem:[%s3120_s3 + $0x70] sm:$0xff]  ;;  %v554_v46 = vld [vmem:[%s3121_s4 + $0x88] sm:$0xff]  ;;  %v1918_v48 = vpack.c.bf16 %v551_v40, %v549_v37  ;;  %s2499_s24 = scalar_lea.vmem %s3118_s1, %s2469_s22  ;;  %s2508_s30 = scalar_lea.vmem %s3117_s0, %s2469_s22 }
  0x10   : > { %v556_v47 = vld [vmem:[%s3121_s4 + $0x98] sm:$0xff]  ;;  %v419_v49 = vld [vmem:[%s3120_s3 + $0x88] sm:$0xff]  ;;  %v1854_v51 = vpack.c.bf16 %v416_v45, %v414_v44  ;;  %v553_v53 = vld [vmem:[%s3121_s4 + $0x80] sm:$0xff]  ;;  %s391_s20 = scalar_lea.vmem %s3119_s2, %s1764_s17 }
  0x11   : > { %1915 = vmatpush1.bf16.msra.mxu1 %v1914_v33  ;;  %v421_v50 = vld [vmem:[%s3120_s3 + $0x98] sm:$0xff]  ;;  %v1920_v52 = vpack.c.bf16 %v556_v47, %v554_v46  ;;  %v555_v54 = vld [vmem:[%s3121_s4 + $0x90] sm:$0xff]  ;;  %v418_v55 = vld [vmem:[%s3120_s3 + $0x80] sm:$0xff] }
  0x12   : > { %1851 = vmatpush1.bf16.msra.mxu0 %v1850_v38  ;;  %1917 = vmatprep.subr.bf16.mxu1 %v1916_v39  ;;  %v1856_v56 = vpack.c.bf16 %v421_v50, %v419_v49  ;;  %v420_v57 = vld [vmem:[%s3120_s3 + $0x90] sm:$0xff]  ;;  %v558_v58 = vld [vmem:[%s3121_s4 + $0xa8] sm:$0xff]  ;;  %v560_v59 = vld [vmem:[%s3121_s4 + $0xb8] sm:$0xff]  ;;  %v1922_v62 = vpack.c.bf16 %v555_v54, %v553_v53 }
  0x13   : > { %1853 = vmatprep.subr.bf16.mxu0 %v1852_v43  ;;  %v423_v60 = vld [vmem:[%s3120_s3 + $0xa8] sm:$0xff]  ;;  %v425_v61 = vld [vmem:[%s3120_s3 + $0xb8] sm:$0xff]  ;;  %v1858_v63 = vpack.c.bf16 %v420_v57, %v418_v55  ;;  %v1924_v0 = vpack.c.bf16 %v560_v59, %v558_v58  ;;  %v557_v1 = vld [vmem:[%s3121_s4 + $0xa0] sm:$0xff] }
  0x14   : > { %v559_v2 = vld [vmem:[%s3121_s4 + $0xb0] sm:$0xff]  ;;  %v422_v3 = vld [vmem:[%s3120_s3 + $0xa0] sm:$0xff]  ;;  %v1860_v4 = vpack.c.bf16 %v425_v61, %v423_v60  ;;  %v562_v6 = vld [vmem:[%s3121_s4 + $0xc8] sm:$0xff] }
  0x15   : > { %1919 = vmatpush1.bf16.msra.mxu1 %v1918_v48  ;;  %v424_v5 = vld [vmem:[%s3120_s3 + $0xb0] sm:$0xff]  ;;  %v564_v7 = vld [vmem:[%s3121_s4 + $0xd8] sm:$0xff]  ;;  %v427_v8 = vld [vmem:[%s3120_s3 + $0xc8] sm:$0xff]  ;;  %v1926_v10 = vpack.c.bf16 %v559_v2, %v557_v1 }
  0x16   : > { %1855 = vmatpush1.bf16.msra.mxu0 %v1854_v51  ;;  %1921 = vmatprep.subr.bf16.mxu1 %v1920_v52  ;;  %v429_v9 = vld [vmem:[%s3120_s3 + $0xd8] sm:$0xff]  ;;  %v1862_v11 = vpack.c.bf16 %v424_v5, %v422_v3  ;;  %v1928_v12 = vpack.c.bf16 %v564_v7, %v562_v6  ;;  %v561_v13 = vld [vmem:[%s3121_s4 + $0xc0] sm:$0xff]  ;;  %v563_v14 = vld [vmem:[%s3121_s4 + $0xd0] sm:$0xff] }
  0x17   : > { %1857 = vmatprep.subr.bf16.mxu0 %v1856_v56  ;;  %v426_v15 = vld [vmem:[%s3120_s3 + $0xc0] sm:$0xff]  ;;  %v1864_v16 = vpack.c.bf16 %v429_v9, %v427_v8  ;;  %v428_v17 = vld [vmem:[%s3120_s3 + $0xd0] sm:$0xff]  ;;  %v566_v18 = vld [vmem:[%s3121_s4 + $0xe8] sm:$0xff]  ;;  %v1930_v22 = vpack.c.bf16 %v563_v14, %v561_v13 }
  0x18   : > { %v568_v19 = vld [vmem:[%s3121_s4 + $0xf8] sm:$0xff]  ;;  %v431_v20 = vld [vmem:[%s3120_s3 + $0xe8] sm:$0xff]  ;;  %v1866_v23 = vpack.c.bf16 %v428_v17, %v426_v15  ;;  %v565_v25 = vld [vmem:[%s3121_s4 + $0xe0] sm:$0xff] }
  0x19   : > { %1923 = vmatpush1.bf16.msra.mxu1 %v1922_v62  ;;  %v433_v21 = vld [vmem:[%s3120_s3 + $0xf8] sm:$0xff]  ;;  %v1932_v24 = vpack.c.bf16 %v568_v19, %v566_v18  ;;  %v567_v26 = vld [vmem:[%s3121_s4 + $0xf0] sm:$0xff]  ;;  %v430_v27 = vld [vmem:[%s3120_s3 + $0xe0] sm:$0xff] }
  0x1a   : > { %1859 = vmatpush1.bf16.msra.mxu0 %v1858_v63  ;;  %1925 = vmatprep.subr.bf16.mxu1 %v1924_v0  ;;  %v1868_v28 = vpack.c.bf16 %v433_v21, %v431_v20  ;;  %v432_v29 = vld [vmem:[%s3120_s3 + $0xf0] sm:$0xff]  ;;  %v570_v30 = vld [vmem:[%s3121_s4 + $0x108] sm:$0xff]  ;;  %v572_v31 = vld [vmem:[%s3121_s4 + $0x118] sm:$0xff]  ;;  %v1934_v34 = vpack.c.bf16 %v567_v26, %v565_v25 }
  0x1b   : > { %1861 = vmatprep.subr.bf16.mxu0 %v1860_v4  ;;  %v435_v32 = vld [vmem:[%s3120_s3 + $0x108] sm:$0xff]  ;;  %v437_v33 = vld [vmem:[%s3120_s3 + $0x118] sm:$0xff]  ;;  %v1870_v35 = vpack.c.bf16 %v432_v29, %v430_v27  ;;  %v1936_v36 = vpack.c.bf16 %v572_v31, %v570_v30  ;;  %v569_v37 = vld [vmem:[%s3121_s4 + $0x100] sm:$0xff] }
  0x1c   : > { %v571_v38 = vld [vmem:[%s3121_s4 + $0x110] sm:$0xff]  ;;  %v434_v39 = vld [vmem:[%s3120_s3 + $0x100] sm:$0xff]  ;;  %v1872_v40 = vpack.c.bf16 %v437_v33, %v435_v32  ;;  %v574_v42 = vld [vmem:[%s3121_s4 + $0x128] sm:$0xff] }
  0x1d   : > { %1927 = vmatpush1.bf16.msra.mxu1 %v1926_v10  ;;  %v436_v41 = vld [vmem:[%s3120_s3 + $0x110] sm:$0xff]  ;;  %v576_v43 = vld [vmem:[%s3121_s4 + $0x138] sm:$0xff]  ;;  %v439_v44 = vld [vmem:[%s3120_s3 + $0x128] sm:$0xff]  ;;  %v1938_v46 = vpack.c.bf16 %v571_v38, %v569_v37 }
  0x1e   : > { %1863 = vmatpush1.bf16.msra.mxu0 %v1862_v11  ;;  %1929 = vmatprep.subr.bf16.mxu1 %v1928_v12  ;;  %v441_v45 = vld [vmem:[%s3120_s3 + $0x138] sm:$0xff]  ;;  %v1874_v47 = vpack.c.bf16 %v436_v41, %v434_v39  ;;  %v1940_v48 = vpack.c.bf16 %v576_v43, %v574_v42  ;;  %v573_v49 = vld [vmem:[%s3121_s4 + $0x120] sm:$0xff]  ;;  %v575_v50 = vld [vmem:[%s3121_s4 + $0x130] sm:$0xff] }
  0x1f   : > { %1865 = vmatprep.subr.bf16.mxu0 %v1864_v16  ;;  %v438_v51 = vld [vmem:[%s3120_s3 + $0x120] sm:$0xff]  ;;  %v1876_v52 = vpack.c.bf16 %v441_v45, %v439_v44  ;;  %v440_v53 = vld [vmem:[%s3120_s3 + $0x130] sm:$0xff]  ;;  %v578_v54 = vld [vmem:[%s3121_s4 + $0x148] sm:$0xff]  ;;  %v1942_v58 = vpack.c.bf16 %v575_v50, %v573_v49 }
  0x20   : > { %v580_v55 = vld [vmem:[%s3121_s4 + $0x158] sm:$0xff]  ;;  %v443_v56 = vld [vmem:[%s3120_s3 + $0x148] sm:$0xff]  ;;  %v1878_v59 = vpack.c.bf16 %v440_v53, %v438_v51  ;;  %v577_v61 = vld [vmem:[%s3121_s4 + $0x140] sm:$0xff] }
  0x21   : > { %1931 = vmatpush1.bf16.msra.mxu1 %v1930_v22  ;;  %v445_v57 = vld [vmem:[%s3120_s3 + $0x158] sm:$0xff]  ;;  %v1944_v60 = vpack.c.bf16 %v580_v55, %v578_v54  ;;  %v579_v62 = vld [vmem:[%s3121_s4 + $0x150] sm:$0xff]  ;;  %v442_v63 = vld [vmem:[%s3120_s3 + $0x140] sm:$0xff] }
  0x22   : > { %1867 = vmatpush1.bf16.msra.mxu0 %v1866_v23  ;;  %1933 = vmatprep.subr.bf16.mxu1 %v1932_v24  ;;  %v1880_v0 = vpack.c.bf16 %v445_v57, %v443_v56  ;;  %v444_v1 = vld [vmem:[%s3120_s3 + $0x150] sm:$0xff]  ;;  %v582_v2 = vld [vmem:[%s3121_s4 + $0x168] sm:$0xff]  ;;  %v584_v3 = vld [vmem:[%s3121_s4 + $0x178] sm:$0xff]  ;;  %v1946_v6 = vpack.c.bf16 %v579_v62, %v577_v61 }
  0x23   : > { %1869 = vmatprep.subr.bf16.mxu0 %v1868_v28  ;;  %v447_v4 = vld [vmem:[%s3120_s3 + $0x168] sm:$0xff]  ;;  %v449_v5 = vld [vmem:[%s3120_s3 + $0x178] sm:$0xff]  ;;  %v581_v7 = vld [vmem:[%s3121_s4 + $0x160] sm:$0xff]  ;;  %v1882_v8 = vpack.c.bf16 %v444_v1, %v442_v63  ;;  %v1948_v9 = vpack.c.bf16 %v584_v3, %v582_v2 }
  0x24   : > { %v583_v10 = vld [vmem:[%s3121_s4 + $0x170] sm:$0xff]  ;;  %v446_v11 = vld [vmem:[%s3120_s3 + $0x160] sm:$0xff]  ;;  %v1884_v13 = vpack.c.bf16 %v449_v5, %v447_v4  ;;  %v586_v14 = vld [vmem:[%s3121_s4 + $0x188] sm:$0xff] }
  0x25   : > { %1935 = vmatpush1.bf16.msra.mxu1 %v1934_v34  ;;  %v448_v12 = vld [vmem:[%s3120_s3 + $0x170] sm:$0xff]  ;;  %v588_v15 = vld [vmem:[%s3121_s4 + $0x198] sm:$0xff]  ;;  %v2526_v16 = vld [vmem:[%s2499_s24 + $0x8] sm:$0xff]  ;;  %v1950_v20 = vpack.c.bf16 %v583_v10, %v581_v7 }
  0x26   : > { %1871 = vmatpush1.bf16.msra.mxu0 %v1870_v35  ;;  %1937 = vmatprep.subr.bf16.mxu1 %v1936_v36  ;;  %v451_v17 = vld [vmem:[%s3120_s3 + $0x188] sm:$0xff]  ;;  %v453_v18 = vld [vmem:[%s3120_s3 + $0x198] sm:$0xff]  ;;  %v1886_v21 = vpack.c.bf16 %v448_v12, %v446_v11  ;;  %v1952_v22 = vpack.c.bf16 %v588_v15, %v586_v14  ;;  %v585_v23 = vld [vmem:[%s3121_s4 + $0x180] sm:$0xff] }
  0x27   : > { %1873 = vmatprep.subr.bf16.mxu0 %v1872_v40  ;;  %665 = vmatprep.mubr.f32.mxu1 %v2526_v16  ;;  %v2536_v19 = vld [vmem:[%s2508_s30 + $0x8] sm:$0xff]  ;;  %v587_v24 = vld [vmem:[%s3121_s4 + $0x190] sm:$0xff]  ;;  %v450_v25 = vld [vmem:[%s3120_s3 + $0x180] sm:$0xff]  ;;  %v1888_v26 = vpack.c.bf16 %v453_v18, %v451_v17 }
  0x28   : > { %530 = vmatprep.mubr.f32.mxu0 %v2536_v19  ;;  %v452_v27 = vld [vmem:[%s3120_s3 + $0x190] sm:$0xff]  ;;  %v590_v28 = vld [vmem:[%s3121_s4 + $0x1a8] sm:$0xff]  ;;  %v592_v29 = vld [vmem:[%s3121_s4 + $0x1b8] sm:$0xff]  ;;  %v1954_v32 = vpack.c.bf16 %v587_v24, %v585_v23 }
  0x29   : > { %1939 = vmatpush1.bf16.msra.mxu1 %v1938_v46  ;;  %v455_v30 = vld [vmem:[%s3120_s3 + $0x1a8] sm:$0xff]  ;;  %v457_v31 = vld [vmem:[%s3120_s3 + $0x1b8] sm:$0xff]  ;;  %v1890_v33 = vpack.c.bf16 %v452_v27, %v450_v25  ;;  %v1956_v34 = vpack.c.bf16 %v592_v29, %v590_v28  ;;  %v589_v35 = vld [vmem:[%s3121_s4 + $0x1a0] sm:$0xff] }
  0x2a   : > { %1875 = vmatpush1.bf16.msra.mxu0 %v1874_v47  ;;  %1941 = vmatprep.subr.bf16.mxu1 %v1940_v48  ;;  %v591_v36 = vld [vmem:[%s3121_s4 + $0x1b0] sm:$0xff]  ;;  %v454_v37 = vld [vmem:[%s3120_s3 + $0x1a0] sm:$0xff]  ;;  %v1892_v38 = vpack.c.bf16 %v457_v31, %v455_v30  ;;  %v594_v40 = vld [vmem:[%s3121_s4 + $0x1c8] sm:$0xff] }
  0x2b   : > { %1877 = vmatprep.subr.bf16.mxu0 %v1876_v52  ;;  %v456_v39 = vld [vmem:[%s3120_s3 + $0x1b0] sm:$0xff]  ;;  %v596_v41 = vld [vmem:[%s3121_s4 + $0x1d8] sm:$0xff]  ;;  %v459_v42 = vld [vmem:[%s3120_s3 + $0x1c8] sm:$0xff]  ;;  %v1958_v44 = vpack.c.bf16 %v591_v36, %v589_v35 }
  0x2c   : > { %v461_v43 = vld [vmem:[%s3120_s3 + $0x1d8] sm:$0xff]  ;;  %v1894_v45 = vpack.c.bf16 %v456_v39, %v454_v37  ;;  %v1960_v46 = vpack.c.bf16 %v596_v41, %v594_v40  ;;  %v593_v47 = vld [vmem:[%s3121_s4 + $0x1c0] sm:$0xff]  ;;  %v595_v48 = vld [vmem:[%s3121_s4 + $0x1d0] sm:$0xff] }
  0x2d   : > { %1943 = vmatpush1.bf16.msra.mxu1 %v1942_v58  ;;  %v458_v49 = vld [vmem:[%s3120_s3 + $0x1c0] sm:$0xff]  ;;  %v1896_v50 = vpack.c.bf16 %v461_v43, %v459_v42  ;;  %v460_v51 = vld [vmem:[%s3120_s3 + $0x1d0] sm:$0xff]  ;;  %v598_v52 = vld [vmem:[%s3121_s4 + $0x1e8] sm:$0xff]  ;;  %v1962_v56 = vpack.c.bf16 %v595_v48, %v593_v47 }
  0x2e   : > { %1879 = vmatpush1.bf16.msra.mxu0 %v1878_v59  ;;  %1945 = vmatprep.subr.bf16.mxu1 %v1944_v60  ;;  %v600_v53 = vld [vmem:[%s3121_s4 + $0x1f8] sm:$0xff]  ;;  %v463_v54 = vld [vmem:[%s3120_s3 + $0x1e8] sm:$0xff]  ;;  %v1898_v57 = vpack.c.bf16 %v460_v51, %v458_v49  ;;  %v597_v59 = vld [vmem:[%s3121_s4 + $0x1e0] sm:$0xff] }
  0x2f   : > { %1881 = vmatprep.subr.bf16.mxu0 %v1880_v0  ;;  %v465_v55 = vld [vmem:[%s3120_s3 + $0x1f8] sm:$0xff]  ;;  %v1964_v58 = vpack.c.bf16 %v600_v53, %v598_v52  ;;  %v599_v60 = vld [vmem:[%s3121_s4 + $0x1f0] sm:$0xff]  ;;  %v462_v62 = vld [vmem:[%s3120_s3 + $0x1e0] sm:$0xff] }
  0x30   : > { %v1900_v61 = vpack.c.bf16 %v465_v55, %v463_v54  ;;  %v464_v63 = vld [vmem:[%s3120_s3 + $0x1f0] sm:$0xff]  ;;  %v673_v0 = vld [vmem:[%s3122_s5 + $0x8] sm:$0xff]  ;;  %v675_v1 = vld [vmem:[%s3122_s5 + $0x18] sm:$0xff]  ;;  %v1966_v2 = vpack.c.bf16 %v599_v60, %v597_v59 }
  0x31   : > { %1947 = vmatpush1.bf16.msra.mxu1 %v1946_v6  ;;  %v1902_v3 = vpack.c.bf16 %v464_v63, %v462_v62  ;;  %v1968_v4 = vpack.c.bf16 %v675_v1, %v673_v0  ;;  %v672_v5 = vld [vmem:[%s3122_s5] sm:$0xff]  ;;  %v674_v6 = vld [vmem:[%s3122_s5 + $0x10] sm:$0xff]  ;;  %v677_v7 = vld [vmem:[%s3122_s5 + $0x28] sm:$0xff] }
  0x32   : > { %1883 = vmatpush1.bf16.msra.mxu0 %v1882_v8  ;;  %1949 = vmatprep.subr.bf16.mxu1 %v1948_v9  ;;  %v679_v8 = vld [vmem:[%s3122_s5 + $0x38] sm:$0xff]  ;;  %v2642_v9 = vld [vmem:[%s2499_s24] sm:$0xff]  ;;  %v1970_v11 = vpack.c.bf16 %v674_v6, %v672_v5  ;;  %v678_v14 = vld [vmem:[%s3122_s5 + $0x30] sm:$0xff] }
  0x33   : > { %1885 = vmatprep.subr.bf16.mxu0 %v1884_v13  ;;  %v2645_v10 = vld [vmem:[%s2508_s30] sm:$0xff]  ;;  %v1972_v12 = vpack.c.bf16 %v679_v8, %v677_v7  ;;  %v681_v15 = vld [vmem:[%s3122_s5 + $0x48] sm:$0xff]  ;;  %v683_v17 = vld [vmem:[%s3122_s5 + $0x58] sm:$0xff] }
  0x34   : > { %v676_v13 = vld [vmem:[%s3122_s5 + $0x20] sm:$0xff]  ;;  %v685_v23 = vld [vmem:[%s3122_s5 + $0x68] sm:$0xff]  ;;  %v687_v24 = vld [vmem:[%s3122_s5 + $0x78] sm:$0xff] }
  0x35   : > { %1951 = vmatpush1.bf16.msra.mxu1 %v1950_v20  ;;  %v1974_v18 = vpack.c.bf16 %v678_v14, %v676_v13  ;;  %v1976_v20 = vpack.c.bf16 %v683_v17, %v681_v15  ;;  %v1980_v25 = vpack.c.bf16 %v687_v24, %v685_v23  ;;  %v686_v27 = vld [vmem:[%s3122_s5 + $0x70] sm:$0xff]  ;;  %v689_v28 = vld [vmem:[%s3122_s5 + $0x88] sm:$0xff]  ;;  %v691_v29 = vld [vmem:[%s3122_s5 + $0x98] sm:$0xff] }
  0x36   : > { %1887 = vmatpush1.bf16.msra.mxu0 %v1886_v21  ;;  %1953 = vmatprep.subr.bf16.mxu1 %v1952_v22  ;;  %v680_v21 = vld [vmem:[%s3122_s5 + $0x40] sm:$0xff]  ;;  %v682_v22 = vld [vmem:[%s3122_s5 + $0x50] sm:$0xff]  ;;  %v1984_v31 = vpack.c.bf16 %v691_v29, %v689_v28  ;;  %v695_v35 = vld [vmem:[%s3122_s5 + $0xb8] sm:$0xff] }
  0x37   : > { %1889 = vmatprep.subr.bf16.mxu0 %v1888_v26  ;;  %v684_v26 = vld [vmem:[%s3122_s5 + $0x60] sm:$0xff]  ;;  %v694_v39 = vld [vmem:[%s3122_s5 + $0xb0] sm:$0xff]  ;;  %v697_v40 = vld [vmem:[%s3122_s5 + $0xc8] sm:$0xff] }
  0x38   : > { %v1982_v30 = vpack.c.bf16 %v686_v27, %v684_v26  ;;  %v699_v41 = vld [vmem:[%s3122_s5 + $0xd8] sm:$0xff]  ;;  %v702_v51 = vld [vmem:[%s3122_s5 + $0xf0] sm:$0xff]  ;;  %v705_v52 = vld [vmem:[%s3122_s5 + $0x108] sm:$0xff] }
  0x39   : > { %1955 = vmatpush1.bf16.msra.mxu1 %v1954_v32  ;;  %v688_v32 = vld [vmem:[%s3122_s5 + $0x80] sm:$0xff]  ;;  %v1992_v43 = vpack.c.bf16 %v699_v41, %v697_v40  ;;  %v703_v47 = vld [vmem:[%s3122_s5 + $0xf8] sm:$0xff]  ;;  %v710_v63 = vld [vmem:[%s3122_s5 + $0x130] sm:$0xff]  ;;  %v2138_v40 = vmov 0.0  }
  0x3a   : > { %1891 = vmatpush1.bf16.msra.mxu0 %v1890_v33  ;;  %1957 = vmatprep.subr.bf16.mxu1 %v1956_v34  ;;  %v690_v33 = vld [vmem:[%s3122_s5 + $0x90] sm:$0xff]  ;;  %v693_v34 = vld [vmem:[%s3122_s5 + $0xa8] sm:$0xff]  ;;  %v707_v53 = vld [vmem:[%s3122_s5 + $0x118] sm:$0xff] }
  0x3b   : > { %1893 = vmatprep.subr.bf16.mxu0 %v1892_v38  ;;  %v1986_v36 = vpack.c.bf16 %v690_v33, %v688_v32  ;;  %v1988_v37 = vpack.c.bf16 %v695_v35, %v693_v34  ;;  %v692_v38 = vld [vmem:[%s3122_s5 + $0xa0] sm:$0xff]  ;;  %v2000_v55 = vpack.c.bf16 %v707_v53, %v705_v52  ;;  %v711_v59 = vld [vmem:[%s3122_s5 + $0x138] sm:$0xff]  ;;  %v713_v0 = vld [vmem:[%s3122_s5 + $0x148] sm:$0xff] }
  0x3c   : > { %v1990_v42 = vpack.c.bf16 %v694_v39, %v692_v38  ;;  %v708_v62 = vld [vmem:[%s3122_s5 + $0x120] sm:$0xff]  ;;  %v715_v1 = vld [vmem:[%s3122_s5 + $0x158] sm:$0xff]  ;;  %v714_v5 = vld [vmem:[%s3122_s5 + $0x150] sm:$0xff] }
  0x3d   : > { %1959 = vmatpush1.bf16.msra.mxu1 %v1958_v44  ;;  %v696_v44 = vld [vmem:[%s3122_s5 + $0xc0] sm:$0xff]  ;;  %v717_v6 = vld [vmem:[%s3122_s5 + $0x168] sm:$0xff]  ;;  %v719_v7 = vld [vmem:[%s3122_s5 + $0x178] sm:$0xff] }
  0x3e   : > { %1895 = vmatpush1.bf16.msra.mxu0 %v1894_v45  ;;  %1961 = vmatprep.subr.bf16.mxu1 %v1960_v46  ;;  %v698_v45 = vld [vmem:[%s3122_s5 + $0xd0] sm:$0xff]  ;;  %v701_v46 = vld [vmem:[%s3122_s5 + $0xe8] sm:$0xff]  ;;  %v723_v15 = vld [vmem:[%s3122_s5 + $0x198] sm:$0xff] }
  0x3f   : > { %1897 = vmatprep.subr.bf16.mxu0 %v1896_v50  ;;  %v1994_v48 = vpack.c.bf16 %v698_v45, %v696_v44  ;;  %v1996_v49 = vpack.c.bf16 %v703_v47, %v701_v46  ;;  %v700_v50 = vld [vmem:[%s3122_s5 + $0xe0] sm:$0xff]  ;;  %v718_v13 = vld [vmem:[%s3122_s5 + $0x170] sm:$0xff]  ;;  %v721_v14 = vld [vmem:[%s3122_s5 + $0x188] sm:$0xff] }
  0x40   : > { %v1998_v54 = vpack.c.bf16 %v702_v51, %v700_v50  ;;  %v727_v23 = vld [vmem:[%s3122_s5 + $0x1b8] sm:$0xff]  ;;  %v726_v26 = vld [vmem:[%s3122_s5 + $0x1b0] sm:$0xff]  ;;  %v729_v27 = vld [vmem:[%s3122_s5 + $0x1c8] sm:$0xff] }
  0x41   : > { %1963 = vmatpush1.bf16.msra.mxu1 %v1962_v56  ;;  %v704_v56 = vld [vmem:[%s3122_s5 + $0x100] sm:$0xff]  ;;  %v731_v28 = vld [vmem:[%s3122_s5 + $0x1d8] sm:$0xff]  ;;  %v730_v32 = vld [vmem:[%s3122_s5 + $0x1d0] sm:$0xff] }
  0x42   : > { %1899 = vmatpush1.bf16.msra.mxu0 %v1898_v57  ;;  %1965 = vmatprep.subr.bf16.mxu1 %v1964_v58  ;;  %v706_v57 = vld [vmem:[%s3122_s5 + $0x110] sm:$0xff]  ;;  %v709_v58 = vld [vmem:[%s3122_s5 + $0x128] sm:$0xff]  ;;  %v735_v34 = vld [vmem:[%s3122_s5 + $0x1f8] sm:$0xff] }
  0x43   : > { %1901 = vmatprep.subr.bf16.mxu0 %v1900_v61  ;;  %v2002_v60 = vpack.c.bf16 %v706_v57, %v704_v56  ;;  %v2004_v61 = vpack.c.bf16 %v711_v59, %v709_v58  ;;  %v733_v33 = vld [vmem:[%s3122_s5 + $0x1e8] sm:$0xff]  ;;  %v734_v38 = vld [vmem:[%s3122_s5 + $0x1f0] sm:$0xff]  ;;  %v2855_v46 = vld [vmem:[%s391_s20] sm:$0xff]  ;;  %s396_s20 = scalar_lea.vmem %s3127_s10, %s2469_s22 }
  0x44   : > { %vm884_vm2 = vcmp.eq.f32.partialorder %v2855_v46, 0.0 }
  0x45   : > { %1967 = vmatpush1.bf16.msra.mxu1 %v1966_v2  ;;  %v2006_v2 = vpack.c.bf16 %v710_v63, %v708_v62 }
  0x46   : > { %1903 = vmatpush1.bf16.msra.mxu0 %v1902_v3  ;;  %v2008_v3 = vpack.c.bf16 %v715_v1, %v713_v0  ;;  %1820 = vmatprep.subr.mxu1 %v2138_v40 }
  0x47   : > { %1969 = vmatprep.subr.bf16.mxu0 %v1968_v4  ;;  %v712_v4 = vld [vmem:[%s3122_s5 + $0x140] sm:$0xff] }
  0x48   : > { %666 = vmatmul.mubr.f32.vlgmr.msra.gmra.mrb[0].mxu1 %v2642_v9  ;;  %v2010_v8 = vpack.c.bf16 %v714_v5, %v712_v4 }
  0x49   : > { %531 = vmatmul.mubr.f32.vlgmr.msra.gmra.mrb[0].mxu0 %v2645_v10  ;;  %1822 = vmatprep.mubr.msk.f32.mxu1 %vm2139_vm0, %v2138_v40 }
  0x4a   : > { %1971 = vmatpush1.bf16.msra.mxu0 %v1970_v11  ;;  %800 = vmatprep.mubr.f32.mxu0 %v2526_v16  ;;  %v1978_v16 = vpack.c.bf16 %v682_v22, %v680_v21  ;;  %v2012_v11 = vpack.c.bf16 %v719_v7, %v717_v6  ;;  %v722_v21 = vld [vmem:[%s3122_s5 + $0x190] sm:$0xff]  ;;  %v725_v22 = vld [vmem:[%s3122_s5 + $0x1a8] sm:$0xff] }
  0x4b   : > { %1973 = vmatprep.subr.bf16.mxu0 %v1972_v12  ;;  %v716_v12 = vld [vmem:[%s3122_s5 + $0x160] sm:$0xff] }
  0x4c   : > { %v2014_v17 = vpack.c.bf16 %v718_v13, %v716_v12 }
  0x4e   : > { %1975 = vmatpush1.bf16.msra.mxu0 %v1974_v18  ;;  %v2016_v18 = vpack.c.bf16 %v723_v15, %v721_v14 }
  0x4f   : > { %1977 = vmatprep.subr.bf16.mxu0 %v1976_v20  ;;  %v720_v20 = vld [vmem:[%s3122_s5 + $0x180] sm:$0xff] }
  0x50   : > { %v2018_v24 = vpack.c.bf16 %v722_v21, %v720_v20 }
  0x52   : > { %1979 = vmatpush1.bf16.msra.mxu0 %v1978_v16  ;;  %v2020_v16 = vpack.c.bf16 %v727_v23, %v725_v22 }
  0x53   : > { %1981 = vmatprep.subr.bf16.mxu0 %v1980_v25  ;;  %v724_v25 = vld [vmem:[%s3122_s5 + $0x1a0] sm:$0xff] }
  0x54   : > { %v2022_v29 = vpack.c.bf16 %v726_v26, %v724_v25 }
  0x56   : > { %1983 = vmatpush1.bf16.msra.mxu0 %v1982_v30  ;;  %v2024_v30 = vpack.c.bf16 %v731_v28, %v729_v27 }
  0x57   : > { %1985 = vmatprep.subr.bf16.mxu0 %v1984_v31  ;;  %v728_v31 = vld [vmem:[%s3122_s5 + $0x1c0] sm:$0xff] }
  0x58   : > { %v2026_v35 = vpack.c.bf16 %v730_v32, %v728_v31 }
  0x5a   : > { %1987 = vmatpush1.bf16.msra.mxu0 %v1986_v36  ;;  %v2028_v36 = vpack.c.bf16 %v735_v34, %v733_v33 }
  0x5b   : > { %1989 = vmatprep.subr.bf16.mxu0 %v1988_v37  ;;  %v732_v37 = vld [vmem:[%s3122_s5 + $0x1e0] sm:$0xff] }
  0x5c   : > { %v2030_v39 = vpack.c.bf16 %v734_v38, %v732_v37 }
  0x5e   : > { %1991 = vmatpush1.bf16.msra.mxu0 %v1990_v42 }
  0x5f   : > { %1993 = vmatprep.subr.bf16.mxu0 %v1992_v43 }
  0x62   : > { %1995 = vmatpush1.bf16.msra.mxu0 %v1994_v48 }
  0x63   : > { %1997 = vmatprep.subr.bf16.mxu0 %v1996_v49 }
  0x66   : > { %1999 = vmatpush1.bf16.msra.mxu0 %v1998_v54 }
  0x67   : > { %2001 = vmatprep.subr.bf16.mxu0 %v2000_v55 }
  0x6a   : > { %2003 = vmatpush1.bf16.msra.mxu0 %v2002_v60 }
  0x6b   : > { %2005 = vmatprep.subr.bf16.mxu0 %v2004_v61 }
  0x6e   : > { %2007 = vmatpush1.bf16.msra.mxu0 %v2006_v2 }
  0x6f   : > { %2009 = vmatprep.subr.bf16.mxu0 %v2008_v3 }
  0x72   : > { %2011 = vmatpush1.bf16.msra.mxu0 %v2010_v8 }
  0x73   : > { %2013 = vmatprep.subr.bf16.mxu0 %v2012_v11 }
  0x76   : > { %2015 = vmatpush1.bf16.msra.mxu0 %v2014_v17 }
  0x77   : > { %2017 = vmatprep.subr.bf16.mxu0 %v2016_v18 }
  0x7a   : > { %2019 = vmatpush1.bf16.msra.mxu0 %v2018_v24 }
  0x7b   : > { %2021 = vmatprep.subr.bf16.mxu0 %v2020_v16 }
  0x7e   : > { %2023 = vmatpush1.bf16.msra.mxu0 %v2022_v29 }
  0x7f   : > { %2025 = vmatprep.subr.bf16.mxu0 %v2024_v30 }
  0x82   : > { %2027 = vmatpush1.bf16.msra.mxu0 %v2026_v35 }
  0x83   : > { %2029 = vmatprep.subr.bf16.mxu0 %v2028_v36 }
  0x86   : > { %2031 = vmatpush1.bf16.msra.mxu0 %v2030_v39 }
  0x87   : > { %1800 = vmatprep.subr.mxu0 %v2138_v40 }
  0x89   : > { %801 = vmatmul.mubr.f32.vlgmr.msra.gmra.mrb[2].mxu0 %v2642_v9 }
  0x8a   : > { %1802 = vmatprep.mubr.msk.f32.mxu0 %vm2139_vm0, %v2138_v40 }
 0x11b   : > { %v667_v41 = vpop.f32.mrb[0].mxu1 }
 0x11c   : > { %974 = vrot.lane.b32.xlu1 %v667_v41, %s2140_s16  ;;  %v669_v42 = vpop.f32.mrb[1].mxu1  ;;  %1801 = vmatpush3.xpose.msk.msra.mxu0 %vm807_vm1, %v667_v41  ;;  %v532_v9 = vpop.f32.mrb[0].mxu0 }
 0x11d   : > { %1821 = vmatpush3.xpose.msk.msra.mxu1 %vm807_vm1, %v669_v42  ;;  %v534_v43 = vpop.f32.mrb[1].mxu0  ;;  %1805 = vmatprep.subr.mxu0 %v2138_v40 }
 0x11e   : > { %1825 = vmatprep.subr.mxu1 %v2138_v40 }
 0x11f   : > { %1803 = vmatmul.mubr.msk.f32.vlgmr.msra.gmra.mrb[4].mxu0 %vm807_vm1, %v532_v9 }
 0x120   : > { %1302 = vrot.lane.b32.xlu1 %v534_v43, %s2140_s16  ;;  %1823 = vmatmul.mubr.msk.f32.vlgmr.msra.gmra.mrb[2].mxu1 %vm807_vm1, %v534_v43 }
 0x121   : > { %1807 = vmatprep.mubr.msk.f32.mxu0 %vm2139_vm0, %v2138_v40  ;;  %1827 = vmatprep.mubr.msk.f32.mxu1 %vm2139_vm0, %v2138_v40 }
 0x15c   : > { %v2843_v44 = vpop.f32.mrb[2].mxu0 }
 0x15d   : > { %v2845_v45 = vpop.f32.mrb[3].mxu0  ;;  %1806 = vmatpush3.msra.mxu0 %v2843_v44 }
 0x15e   : > { %1826 = vmatpush3.msra.mxu1 %v2845_v45  ;;  %1810 = vmatprep.subr.mxu0 %v2138_v40 }
 0x15f   : > { %1830 = vmatprep.subr.mxu1 %v2138_v40 }
 0x18e   : > { %v975_v3 = vpop.permute.xlu1 %974 }
 0x192   : > { %v1303_v4 = vpop.permute.xlu1 %1302 }
 0x1f2   : > { %v880_v47 = vpop.f32.mrb[4].mxu0 }
 0x1f3   : > { %v1804_v48 = vpop.f32.mrb[5].mxu0  ;;  %v1212_v49 = vpop.f32.mrb[2].mxu1  ;;  %v885_v50 = vsel %vm884_vm2, -1e+20, %v880_v47 }
 0x1f4   : > { %v1216_v51 = vsel %vm884_vm2, -1e+20, %v1212_v49  ;;  %v1824_v52 = vpop.f32.mrb[3].mxu1  ;;  %v886_v54 = vmul.f32 0.0625, %v885_v50  ;;  %v1481_v48 = vld [vmem:[%s3123_s6 + $0x8] sm:$0xff]  ;;  %v1480_v49 = vld [vmem:[%s3123_s6] sm:$0xff] }
 0x1f5   : > { %v1217_v53 = vmul.f32 0.0625, %v1216_v51  ;;  %v1482_v51 = vld [vmem:[%s3123_s6 + $0x10] sm:$0xff]  ;;  %v1485_v52 = vld [vmem:[%s3123_s6 + $0x28] sm:$0xff] }
 0x1f6   : > { %v888_v56 = vsel %vm887_vm3, %v886_v54, -inf }
 0x1f7   : > { %v1218_v55 = vsel %vm887_vm3, %v1217_v53, -inf }
 0x1f8   : > { %1219 = vmax.xlane.f32.xlu0 %v1218_v55 }
 0x1fc   : > { %889 = vmax.xlane.f32.xlu0 %v888_v56  ;;  %v1484_v56 = vld [vmem:[%s3123_s6 + $0x20] sm:$0xff] }
 0x212   : > { %1304 = vrot.lane.b32.xlu0 %v669_v42, %s2140_s16 }
 0x285   : > { %v1220_v57 = vpop.xlane.xlu0 %1219 }
 0x286   : > { %v1221_v58 = vsub.f32 %v1217_v53, %v1220_v57  ;;  %v1487_v53 = vld [vmem:[%s3123_s6 + $0x38] sm:$0xff]  ;;  %v1486_v57 = vld [vmem:[%s3123_s6 + $0x30] sm:$0xff] }
 0x287   : > { %v2036_v55 = vpack.c.bf16 %v1487_v53, %v1485_v52  ;;  %v1525_v52 = vld [vmem:[%s3123_s6 + $0x168] sm:$0xff]  ;;  %v1527_v53 = vld [vmem:[%s3123_s6 + $0x178] sm:$0xff] }
 0x288   : > { %v1222_v61 = vmul.f32 1.442695, %v1221_v58  ;;  %v1489_v58 = vld [vmem:[%s3123_s6 + $0x48] sm:$0xff] }
 0x289   : > { %v890_v59 = vpop.xlane.xlu0 %889 }
 0x28a   : > { %v891_v60 = vsub.f32 %v886_v54, %v890_v59  ;;  %v2034_v54 = vpack.c.bf16 %v1482_v51, %v1480_v49  ;;  %v1491_v59 = vld [vmem:[%s3123_s6 + $0x58] sm:$0xff]  ;;  %v1522_v51 = vld [vmem:[%s3123_s6 + $0x150] sm:$0xff] }
 0x28c   : > { %v892_v62 = vmul.f32 1.442695, %v891_v60  ;;  %v2038_v60 = vpack.c.bf16 %v1486_v57, %v1484_v56  ;;  %v1524_v56 = vld [vmem:[%s3123_s6 + $0x160] sm:$0xff]  ;;  %v1526_v57 = vld [vmem:[%s3123_s6 + $0x170] sm:$0xff] }
 0x28d   : > { %v1305_v14 = vpop.permute.xlu0 %1304 }
 0x28e   : > { %2112 = vpow2.f32 %v892_v62  ;;  %v1488_v62 = vld [vmem:[%s3123_s6 + $0x40] sm:$0xff] }
 0x28f   : > { %2114 = vpow2.f32 %v1222_v61  ;;  %v2040_v61 = vpack.c.bf16 %v1491_v59, %v1489_v58  ;;  %v1529_v58 = vld [vmem:[%s3123_s6 + $0x188] sm:$0xff]  ;;  %v1531_v59 = vld [vmem:[%s3123_s6 + $0x198] sm:$0xff] }
 0x298   : > { %v2113_v63 = vpop.eup %2112 }
 0x299   : > { %v894_v0 = vsel %vm887_vm3, %v2113_v63, 0.0  ;;  %v2115_v1 = vpop.eup %2114 }
 0x29a   : > { %895 = vadd.xlane.f32.xlu1 %v894_v0  ;;  %v1224_v2 = vsel %vm887_vm3, %v2115_v1, 0.0  ;;  %v1493_v0 = vld [vmem:[%s3123_s6 + $0x68] sm:$0xff] }
 0x29e   : > { %1225 = vadd.xlane.f32.xlu1 %v1224_v2 }
 0x2af   : > { %972 = vrot.lane.b32.xlu1 %v532_v9, %s2140_s16 }
 0x327   : > { %v896_v5 = vpop.xlane.xlu1 %895 }
 0x328   : > { %2116 = vrcp.f32 %v896_v5  ;;  %v1494_v5 = vld [vmem:[%s3123_s6 + $0x70] sm:$0xff] }
 0x32b   : > { %v1226_v6 = vpop.xlane.xlu1 %1225 }
 0x32c   : > { %2118 = vrcp.f32 %v1226_v6  ;;  %v1497_v6 = vld [vmem:[%s3123_s6 + $0x88] sm:$0xff] }
 0x32f   : > { %v973_v13 = vpop.permute.xlu1 %972 }
 0x332   : > { %v2117_v7 = vpop.eup %2116 }
 0x333   : > { %v898_v8 = vmul.f32 %v2117_v7, %v2113_v63  ;;  %v1490_v63 = vld [vmem:[%s3123_s6 + $0x50] sm:$0xff]  ;;  %v1499_v7 = vld [vmem:[%s3123_s6 + $0x98] sm:$0xff] }
 0x334   : > { %v2042_v2 = vpack.c.bf16 %v1490_v63, %v1488_v62  ;;  %v1528_v62 = vld [vmem:[%s3123_s6 + $0x180] sm:$0xff]  ;;  %v1530_v63 = vld [vmem:[%s3123_s6 + $0x190] sm:$0xff] }
 0x335   : > { %1808 = vmatmul.mubr.msk.f32.vlgmr.msra.gmra.mrb[6].mxu0 %vm887_vm3, %v898_v8 }
 0x336   : > { %v2119_v11 = vpop.eup %2118  ;;  %1811 = vmatpush3.xpose.msk.msra.mxu0 %vm807_vm1, %v975_v3  ;;  %1812 = vmatprep.mubr.msk.f32.mxu0 %vm2139_vm0, %v2138_v40 }
 0x337   : > { %v1228_v12 = vmul.f32 %v2119_v11, %v2115_v1  ;;  %1815 = vmatprep.subr.mxu0 %v2138_v40  ;;  %v1495_v1 = vld [vmem:[%s3123_s6 + $0x78] sm:$0xff]  ;;  %v2048_v11 = vpack.c.bf16 %v1499_v7, %v1497_v6  ;;  %v1537_v6 = vld [vmem:[%s3123_s6 + $0x1c8] sm:$0xff] }
 0x338   : > { %v2044_v3 = vpack.c.bf16 %v1495_v1, %v1493_v0  ;;  %v1533_v0 = vld [vmem:[%s3123_s6 + $0x1a8] sm:$0xff]  ;;  %v1535_v1 = vld [vmem:[%s3123_s6 + $0x1b8] sm:$0xff] }
 0x339   : > { %1813 = vmatmul.mubr.msk.f32.vlgmr.msra.gmra.mrb[8].mxu0 %vm807_vm1, %v973_v13  ;;  %1828 = vmatmul.mubr.msk.f32.vlgmr.msra.gmra.mrb[4].mxu1 %vm887_vm3, %v1228_v12  ;;  %v1496_v12 = vld [vmem:[%s3123_s6 + $0x80] sm:$0xff]  ;;  %v1498_v13 = vld [vmem:[%s3123_s6 + $0x90] sm:$0xff]  ;;  %v1539_v7 = vld [vmem:[%s3123_s6 + $0x1d8] sm:$0xff] }
 0x33a   : > { %1831 = vmatpush3.xpose.msk.msra.mxu1 %vm807_vm1, %v1305_v14  ;;  %1832 = vmatprep.mubr.msk.f32.mxu1 %vm2139_vm0, %v2138_v40  ;;  %v1501_v14 = vld [vmem:[%s3123_s6 + $0xa8] sm:$0xff] }
 0x33b   : > { %1835 = vmatprep.subr.mxu1 %v2138_v40  ;;  %1817 = vmatprep.mubr.msk.f32.mxu0 %vm2139_vm0, %v2138_v40 }
 0x33d   : > { %1833 = vmatmul.mubr.msk.f32.vlgmr.msra.gmra.mrb[6].mxu1 %vm807_vm1, %v1303_v4  ;;  %v1492_v4 = vld [vmem:[%s3123_s6 + $0x60] sm:$0xff] }
 0x33e   : > { %1837 = vmatprep.mubr.msk.f32.mxu1 %vm2139_vm0, %v2138_v40  ;;  %v2046_v8 = vpack.c.bf16 %v1494_v5, %v1492_v4  ;;  %v1532_v4 = vld [vmem:[%s3123_s6 + $0x1a0] sm:$0xff]  ;;  %v1534_v5 = vld [vmem:[%s3123_s6 + $0x1b0] sm:$0xff] }
 0x408   : > { %v2884_v15 = vpop.f32.mrb[6].mxu0 }
 0x409   : > { %v1809_v17 = vpop.f32.mrb[7].mxu0 }
 0x40a   : > { %v1503_v17 = vld [vmem:[%s3123_s6 + $0xb8] sm:$0xff] }
 0x40c   : > { %v1046_v18 = vpop.f32.mrb[8].mxu0  ;;  %v2886_v20 = vpop.f32.mrb[4].mxu1 }
 0x40d   : > { %v1050_v21 = vsel %vm884_vm2, -1e+20, %v1046_v18  ;;  %v1814_v22 = vpop.f32.mrb[9].mxu0  ;;  %v1829_v23 = vpop.f32.mrb[5].mxu1  ;;  %v2050_v18 = vpack.c.bf16 %v1498_v13, %v1496_v12  ;;  %v1536_v12 = vld [vmem:[%s3123_s6 + $0x1c0] sm:$0xff]  ;;  %v1538_v13 = vld [vmem:[%s3123_s6 + $0x1d0] sm:$0xff] }
 0x40e   : > { %v1051_v24 = vmul.f32 0.0625, %v1050_v21  ;;  %v2052_v21 = vpack.c.bf16 %v1503_v17, %v1501_v14  ;;  %v1500_v22 = vld [vmem:[%s3123_s6 + $0xa0] sm:$0xff]  ;;  %v1502_v23 = vld [vmem:[%s3123_s6 + $0xb0] sm:$0xff]  ;;  %v2090_v14 = vpack.c.bf16 %v1538_v13, %v1536_v12  ;;  %v1541_v17 = vld [vmem:[%s3123_s6 + $0x1e8] sm:$0xff] }
 0x410   : > { %v1376_v16 = vpop.f32.mrb[6].mxu1  ;;  %v1052_v25 = vsel %vm887_vm3, %v1051_v24, -inf }
 0x411   : > { %v1380_v26 = vsel %vm884_vm2, -1e+20, %v1376_v16  ;;  %v1834_v27 = vpop.f32.mrb[7].mxu1  ;;  %1053 = vmax.xlane.f32.xlu1 %v1052_v25  ;;  %v1507_v16 = vld [vmem:[%s3123_s6 + $0xd8] sm:$0xff]  ;;  %v2054_v25 = vpack.c.bf16 %v1502_v23, %v1500_v22  ;;  %v1540_v22 = vld [vmem:[%s3123_s6 + $0x1e0] sm:$0xff]  ;;  %v1542_v23 = vld [vmem:[%s3123_s6 + $0x1f0] sm:$0xff] }
 0x412   : > { %v1381_v28 = vmul.f32 0.0625, %v1380_v26  ;;  %v1504_v27 = vld [vmem:[%s3123_s6 + $0xc0] sm:$0xff] }
 0x414   : > { %v1382_v29 = vsel %vm887_vm3, %v1381_v28, -inf }
 0x415   : > { %1383 = vmax.xlane.f32.xlu0 %v1382_v29  ;;  %v1509_v29 = vld [vmem:[%s3123_s6 + $0xe8] sm:$0xff] }
 0x422   : > { %1064 = vrot.lane.b32.xlu1 %v2843_v44, %s2140_s16 }
 0x49e   : > { %v1054_v30 = vpop.xlane.xlu1 %1053 }
 0x49f   : > { %v1055_v31 = vsub.f32 %v1051_v24, %v1054_v30  ;;  %v1505_v24 = vld [vmem:[%s3123_s6 + $0xc8] sm:$0xff]  ;;  %v1511_v30 = vld [vmem:[%s3123_s6 + $0xf8] sm:$0xff] }
 0x4a0   : > { %v2056_v26 = vpack.c.bf16 %v1507_v16, %v1505_v24  ;;  %v2094_v24 = vpack.c.bf16 %v1542_v23, %v1540_v22 }
 0x4a1   : > { %v1056_v32 = vmul.f32 1.442695, %v1055_v31 }
 0x4a2   : > { %v1384_v33 = vpop.xlane.xlu0 %1383  ;;  %v1065_v34 = vpop.permute.xlu1 %1064 }
 0x4a3   : > { %2120 = vpow2.f32 %v1056_v32  ;;  %v1385_v35 = vsub.f32 %v1381_v28, %v1384_v33  ;;  %1816 = vmatpush3.msra.mxu0 %v1065_v34  ;;  %v1506_v28 = vld [vmem:[%s3123_s6 + $0xd0] sm:$0xff]  ;;  %v2060_v32 = vpack.c.bf16 %v1511_v30, %v1509_v29  ;;  %v1508_v33 = vld [vmem:[%s3123_s6 + $0xe0] sm:$0xff] }
 0x4a4   : > { %v2058_v31 = vpack.c.bf16 %v1506_v28, %v1504_v27  ;;  %v1510_v34 = vld [vmem:[%s3123_s6 + $0xf0] sm:$0xff] }
 0x4a5   : > { %v1386_v36 = vmul.f32 1.442695, %v1385_v35  ;;  %v1513_v35 = vld [vmem:[%s3123_s6 + $0x108] sm:$0xff] }
 0x4a7   : > { %2122 = vpow2.f32 %v1386_v36  ;;  %v1515_v36 = vld [vmem:[%s3123_s6 + $0x118] sm:$0xff] }
 0x4ad   : > { %v2121_v37 = vpop.eup %2120 }
 0x4ae   : > { %v1058_v38 = vsel %vm887_vm3, %v2121_v37, 0.0 }
 0x4af   : > { %1059 = vadd.xlane.f32.xlu0 %v1058_v38  ;;  %v2064_v38 = vpack.c.bf16 %v1515_v36, %v1513_v35 }
 0x4b1   : > { %v2123_v39 = vpop.eup %2122 }
 0x4b2   : > { %v1388_v40 = vsel %vm887_vm3, %v2123_v39, 0.0 }
 0x4b3   : > { %1389 = vadd.xlane.f32.xlu0 %v1388_v40  ;;  %v1514_v40 = vld [vmem:[%s3123_s6 + $0x110] sm:$0xff] }
 0x4c9   : > { %1394 = vrot.lane.b32.xlu0 %v2845_v45, %s2140_s16  ;;  %v1483_v45 = vld [vmem:[%s3123_s6 + $0x18] sm:$0xff] }
 0x4ca   : > { %v2032_v50 = vpack.c.bf16 %v1483_v45, %v1481_v48  ;;  %v1523_v48 = vld [vmem:[%s3123_s6 + $0x158] sm:$0xff] }
 0x53c   : > { %v1060_v41 = vpop.xlane.xlu0 %1059 }
 0x53d   : > { %2124 = vrcp.f32 %v1060_v41  ;;  %v1517_v41 = vld [vmem:[%s3123_s6 + $0x128] sm:$0xff] }
 0x540   : > { %v1390_v42 = vpop.xlane.xlu0 %1389 }
 0x541   : > { %2126 = vrcp.f32 %v1390_v42  ;;  %v1519_v42 = vld [vmem:[%s3123_s6 + $0x138] sm:$0xff] }
 0x544   : > { %v1395_v9 = vpop.permute.xlu0 %1394 }
 0x545   : > { %1836 = vmatpush3.msra.mxu1 %v1395_v9 }
 0x546   : > { %2033 = vmatprep.subr.bf16.mxu1 %v2032_v50  ;;  %v1520_v50 = vld [vmem:[%s3123_s6 + $0x140] sm:$0xff] }
 0x547   : > { %v2125_v43 = vpop.eup %2124 }
 0x548   : > { %v1062_v44 = vmul.f32 %v2125_v43, %v2121_v37  ;;  %v2062_v37 = vpack.c.bf16 %v1510_v34, %v1508_v33  ;;  %v2068_v43 = vpack.c.bf16 %v1519_v42, %v1517_v41  ;;  %v1546_v34 = vlaneseq }
 0x54a   : > { %1818 = vmatmul.mubr.msk.f32.vlgmr.msra.gmra.mrb[10].mxu0 %vm887_vm3, %v1062_v44  ;;  %v1516_v44 = vld [vmem:[%s3123_s6 + $0x120] sm:$0xff]  ;;  %v1547_v35 = vshrl.u32 %v1546_v34, 7 }
 0x54b   : > { %v2127_v46 = vpop.eup %2126 }
 0x54c   : > { %v1392_v47 = vmul.f32 %v2127_v46, %v2123_v39  ;;  %v1512_v39 = vld [vmem:[%s3123_s6 + $0x100] sm:$0xff]  ;;  %v1518_v46 = vld [vmem:[%s3123_s6 + $0x130] sm:$0xff]  ;;  %v1548_v36 = vsub.s32 0, %v1547_v35 }
 0x54d   : > { %v2066_v9 = vpack.c.bf16 %v1514_v40, %v1512_v39  ;;  %v2070_v45 = vpack.c.bf16 %v1518_v46, %v1516_v44 }
 0x54e   : > { %1838 = vmatmul.mubr.msk.f32.vlgmr.msra.gmra.mrb[8].mxu1 %vm887_vm3, %v1392_v47  ;;  %v1521_v47 = vld [vmem:[%s3123_s6 + $0x148] sm:$0xff] }
 0x54f   : > { %2035 = vmatpush1.bf16.msra.mxu1 %v2034_v54  ;;  %v2072_v49 = vpack.c.bf16 %v1523_v48, %v1521_v47  ;;  %v2074_v54 = vpack.c.bf16 %v1522_v51, %v1520_v50 }
 0x550   : > { %2037 = vmatprep.subr.bf16.mxu1 %v2036_v55  ;;  %v2076_v55 = vpack.c.bf16 %v1527_v53, %v1525_v52 }
 0x553   : > { %2039 = vmatpush1.bf16.msra.mxu1 %v2038_v60  ;;  %v2078_v60 = vpack.c.bf16 %v1526_v57, %v1524_v56 }
 0x554   : > { %2041 = vmatprep.subr.bf16.mxu1 %v2040_v61  ;;  %v2080_v61 = vpack.c.bf16 %v1531_v59, %v1529_v58 }
 0x557   : > { %2043 = vmatpush1.bf16.msra.mxu1 %v2042_v2  ;;  %v2082_v2 = vpack.c.bf16 %v1530_v63, %v1528_v62 }
 0x558   : > { %2045 = vmatprep.subr.bf16.mxu1 %v2044_v3  ;;  %v2084_v3 = vpack.c.bf16 %v1535_v1, %v1533_v0 }
 0x55b   : > { %2047 = vmatpush1.bf16.msra.mxu1 %v2046_v8  ;;  %v2086_v8 = vpack.c.bf16 %v1534_v5, %v1532_v4 }
 0x55c   : > { %2049 = vmatprep.subr.bf16.mxu1 %v2048_v11  ;;  %v2088_v11 = vpack.c.bf16 %v1539_v7, %v1537_v6 }
 0x55f   : > { %2051 = vmatpush1.bf16.msra.mxu1 %v2050_v18  ;;  %v1543_v18 = vld [vmem:[%s3123_s6 + $0x1f8] sm:$0xff] }
 0x560   : > { %2053 = vmatprep.subr.bf16.mxu1 %v2052_v21  ;;  %v2092_v21 = vpack.c.bf16 %v1543_v18, %v1541_v17 }
 0x563   : > { %2055 = vmatpush1.bf16.msra.mxu1 %v2054_v25 }
 0x564   : > { %2057 = vmatprep.subr.bf16.mxu1 %v2056_v26 }
 0x567   : > { %2059 = vmatpush1.bf16.msra.mxu1 %v2058_v31 }
 0x568   : > { %2061 = vmatprep.subr.bf16.mxu1 %v2060_v32 }
 0x56b   : > { %2063 = vmatpush1.bf16.msra.mxu1 %v2062_v37  ;;  %v1544_v37 = vld [vmem:[%s3124_s7] sm:$0x3] }
 0x56c   : > { %2065 = vmatprep.subr.bf16.mxu1 %v2064_v38  ;;  %v1552_v38 = vsub.s32 1, %v1547_v35  ;;  %v1549_v39 = vrot.slane %v1544_v37, %v1548_v36 }
 0x56e   : > { %v1553_v40 = vrot.slane %v1544_v37, %v1552_v38 }
 0x56f   : > { %2067 = vmatpush1.bf16.msra.mxu1 %v2066_v9 }
 0x570   : > { %2069 = vmatprep.subr.bf16.mxu1 %v2068_v43 }
 0x573   : > { %2071 = vmatpush1.bf16.msra.mxu1 %v2070_v45 }
 0x574   : > { %2073 = vmatprep.subr.bf16.mxu1 %v2072_v49 }
 0x577   : > { %2075 = vmatpush1.bf16.msra.mxu1 %v2074_v54 }
 0x578   : > { %2077 = vmatprep.subr.bf16.mxu1 %v2076_v55 }
 0x57b   : > { %2079 = vmatpush1.bf16.msra.mxu1 %v2078_v60 }
 0x57c   : > { %2081 = vmatprep.subr.bf16.mxu1 %v2080_v61 }
 0x57f   : > { %2083 = vmatpush1.bf16.msra.mxu1 %v2082_v2 }
 0x580   : > { %2085 = vmatprep.subr.bf16.mxu1 %v2084_v3 }
 0x583   : > { %2087 = vmatpush1.bf16.msra.mxu1 %v2086_v8 }
 0x584   : > { %2089 = vmatprep.subr.bf16.mxu1 %v2088_v11 }
 0x587   : > { %2091 = vmatpush1.bf16.msra.mxu1 %v2090_v14 }
 0x588   : > { %2093 = vmatprep.subr.bf16.mxu1 %v2092_v21 }
 0x58b   : > { %2095 = vmatpush1.bf16.msra.mxu1 %v2094_v24 }
 0x61d   : > { %v1136_v16 = vpop.f32.mrb[10].mxu0 }
 0x61e   : > { %v1819_v25 = vpop.f32.mrb[11].mxu0 }
 0x621   : > { %v1466_v26 = vpop.f32.mrb[8].mxu1 }
 0x622   : > { %v2107_v27 = vpack.i.bf16 %v1136_v16, %v1466_v26  ;;  %v1839_v28 = vpop.f32.mrb[9].mxu1 }
 0x624   : > { %2108 = vrot.lane.b32.xlu1 %v2107_v27, %s2140_s16 }
 0x696   : > { %v2109_v29 = vpop.permute.xlu1 %2108 }
 0x697   : > { %v2111_v30 = vunpack.i.h.bf16 %v2109_v29  ;;  %v2110_v31 = vunpack.i.l.bf16 %v2109_v29 }
 0x699   : > { %v1479_v32 = vsel %vm807_vm1, %v2886_v20, %v2110_v31  ;;  %v1478_v33 = vsel %vm807_vm1, %v2884_v15, %v2111_v30 }
 0x69a   : > { %1620 = vmatprep.mubr.f32.mxu1 %v1479_v32 }
 0x69b   : > { %1621 = vmatmul.mubr.f32.vlgmr.msra.gmra.mrb[10].mxu1 %v1478_v33 }
 0x76e   : > { %v1622_v41 = vpop.f32.mrb[10].mxu1 }
 0x76f   : > { %v1623_v42 = vadd.f32 %v1622_v41, %v1549_v39  ;;  %v1624_v9 = vpop.f32.mrb[11].mxu1 }
 0x770   : > { %v1625_v43 = vadd.f32 %v1624_v9, %v1553_v40 }
 0x771   : > { %v1627_v20 = vadd.f32 %v1623_v42, %v2645_v10  ;;  %v1646_v10 = vld [vmem:[%s3125_s8] sm:$0x3] }
 0x772   : > { %v1628_v15 = vadd.f32 %v1625_v43, %v2536_v19  ;;  %v1660_v19 = vld [vmem:[%s3126_s9] sm:$0x3]  ;;  %v1651_v55 = vrot.slane %v1646_v10, %v1548_v36  ;;  %v1655_v56 = vrot.slane %v1646_v10, %v1552_v38 }
 0x773   : > { %v1665_v58 = vrot.slane %v1660_v19, %v1548_v36  ;;  %v1669_v59 = vrot.slane %v1660_v19, %v1552_v38 }
 0x774   : > { %v1629_v44 = vadd.f32 %v1628_v15, %v1627_v20 }
 0x776   : > { %1630 = vadd.xlane.f32.xlu1 %v1629_v44 }
 0x803   : > { %v1631_v46 = vpop.xlane.xlu1 %1630 }
 0x804   : > { %v1633_v47 = vmul.f32 0.00390625, %v1631_v46 }
 0x806   : > { %v1634_v48 = vsub.f32 %v1627_v20, %v1633_v47  ;;  %v1635_v45 = vsub.f32 %v1628_v15, %v1633_v47 }
 0x808   : > { %v1636_v49 = vmul.f32 %v1634_v48, %v1634_v48  ;;  %v1637_v50 = vmul.f32 %v1635_v45, %v1635_v45 }
 0x80a   : > { %v1638_v51 = vadd.f32 %v1637_v50, %v1636_v49 }
 0x80c   : > { %1639 = vadd.xlane.f32.xlu0 %v1638_v51 }
 0x899   : > { %v1640_v52 = vpop.xlane.xlu0 %1639 }
 0x89a   : > { %v1641_v53 = vmul.f32 0.00390625, %v1640_v52 }
 0x89c   : > { %v1642_v54 = vadd.f32 1e-05, %v1641_v53 }
 0x89e   : > { %2128 = vrsqrt.f32 %v1642_v54 }
 0x8a8   : > { %v2129_v57 = vpop.eup %2128 }
 0x8a9   : > { %v1644_v60 = vmul.f32 %v2129_v57, %v1634_v48  ;;  %v1645_v61 = vmul.f32 %v2129_v57, %v1635_v45 }
 0x8ab   : > { %v1658_v62 = vmul.f32 %v1651_v55, %v1644_v60  ;;  %v1659_v63 = vmul.f32 %v1655_v56, %v1645_v61 }
 0x8ad   : > { %v1672_v0 = vadd.f32 %v1665_v58, %v1658_v62  ;;  %v1673_v1 = vadd.f32 %v1669_v59, %v1659_v63 }
 0x8af   : > { %1674 = vst [vmem:[%s396_s20] sm:$0xff] %v1672_v0  ;;  %1675 = vst [vmem:[%s396_s20 + $0x8] sm:$0xff] %v1673_v1 }
 0x8b0 PF: > { %s20_s13 = sadd.s32 1, %s2136_s13  }
 0x8b1   : > { %p17_p4 = scmp.ge.s32.totalorder %s20_s13, 4  }
 0x8b3   :  { %19 = sbr.rel (!%p17_p4) target bundleno = 1 (0x1), region = 96 }

// kernel: transformer_forward.31
= control target key start
LH: loop header
LB: loop body
LE: loop exit
PB: predicated region body
PF: predicated region fallthrough
CT: control target
= control target key end

     0   :  { %s362_s1 = inlined_call_operand.vmem [shape: f32[256,128], index: 1, kind: input, shape index: {}]   ;;  %s363_s0 = inlined_call_operand.vmem [shape: f32[16,256], index: 0, kind: input, shape index: {}]   ;;  %s364_s2 = inlined_call_operand.vmem [shape: f32[1,128], index: 2, kind: input, shape index: {}]   ;;  %s365_s3 = inlined_call_operand.vmem [shape: f32[16,128], index: 3, kind: output, shape index: {}]  }
   0x1   :  { %v34_v0 = vld [vmem:[%s362_s1 + $0x80] sm:$0xff]  ;;  %v35_v1 = vld [vmem:[%s362_s1 + $0x88] sm:$0xff]  ;;  %v36_v5 = vld [vmem:[%s362_s1 + $0x90] sm:$0xff] }
   0x2   :  { %v18_v2 = vld [vmem:[%s362_s1] sm:$0xff]  ;;  %v177_v3 = vpack.c.bf16 %v35_v1, %v34_v0  ;;  %v19_v4 = vld [vmem:[%s362_s1 + $0x8] sm:$0xff]  ;;  %v37_v6 = vld [vmem:[%s362_s1 + $0x98] sm:$0xff] }
   0x3   :  { %v179_v7 = vpack.c.bf16 %v19_v4, %v18_v2  ;;  %v181_v8 = vpack.c.bf16 %v37_v6, %v36_v5  ;;  %v20_v9 = vld [vmem:[%s362_s1 + $0x10] sm:$0xff]  ;;  %v21_v10 = vld [vmem:[%s362_s1 + $0x18] sm:$0xff]  ;;  %v38_v11 = vld [vmem:[%s362_s1 + $0xa0] sm:$0xff] }
   0x4   :  { %178 = vmatprep.subr.bf16.mxu0 %v177_v3  ;;  %209 = vmatprep.subr.bf16.mxu1 %v177_v3  ;;  %v39_v12 = vld [vmem:[%s362_s1 + $0xa8] sm:$0xff]  ;;  %v183_v13 = vpack.c.bf16 %v21_v10, %v20_v9  ;;  %v22_v15 = vld [vmem:[%s362_s1 + $0x20] sm:$0xff]  ;;  %v40_v17 = vld [vmem:[%s362_s1 + $0xb0] sm:$0xff] }
   0x5   :  { %180 = vmatpush3.bf16.msra.mxu0 %v179_v7  ;;  %217 = vmatpush3.bf16.msra.mxu1 %v179_v7  ;;  %v185_v14 = vpack.c.bf16 %v39_v12, %v38_v11  ;;  %v23_v16 = vld [vmem:[%s362_s1 + $0x28] sm:$0xff]  ;;  %v41_v18 = vld [vmem:[%s362_s1 + $0xb8] sm:$0xff]  ;;  %v24_v21 = vld [vmem:[%s362_s1 + $0x30] sm:$0xff] }
   0x6   :  { %182 = vmatprep.subr.bf16.mxu0 %v181_v8  ;;  %210 = vmatprep.subr.bf16.mxu1 %v181_v8  ;;  %v187_v19 = vpack.c.bf16 %v23_v16, %v22_v15  ;;  %v189_v20 = vpack.c.bf16 %v41_v18, %v40_v17  ;;  %v25_v22 = vld [vmem:[%s362_s1 + $0x38] sm:$0xff]  ;;  %v42_v23 = vld [vmem:[%s362_s1 + $0xc0] sm:$0xff]  ;;  %v43_v24 = vld [vmem:[%s362_s1 + $0xc8] sm:$0xff] }
   0x7   :  { %v15_v25 = vld [vmem:[%s363_s0 + $0x8] sm:$0xff]  ;;  %v17_v26 = vld [vmem:[%s363_s0 + $0x18] sm:$0xff]  ;;  %v191_v27 = vpack.c.bf16 %v25_v22, %v24_v21  ;;  %v193_v28 = vpack.c.bf16 %v43_v24, %v42_v23  ;;  %v26_v29 = vld [vmem:[%s362_s1 + $0x40] sm:$0xff] }
   0x8   :  { %121 = vmatprep.mubr.f32.mxu0 %v15_v25  ;;  %v27_v30 = vld [vmem:[%s362_s1 + $0x48] sm:$0xff]  ;;  %v44_v31 = vld [vmem:[%s362_s1 + $0xd0] sm:$0xff]  ;;  %v45_v32 = vld [vmem:[%s362_s1 + $0xd8] sm:$0xff]  ;;  %126 = vmatprep.mubr.f32.mxu1 %v17_v26 }
   0x9   :  { %184 = vmatpush3.bf16.msra.mxu0 %v183_v13  ;;  %218 = vmatpush3.bf16.msra.mxu1 %v183_v13  ;;  %v195_v33 = vpack.c.bf16 %v27_v30, %v26_v29  ;;  %v197_v34 = vpack.c.bf16 %v45_v32, %v44_v31  ;;  %v28_v35 = vld [vmem:[%s362_s1 + $0x50] sm:$0xff]  ;;  %v29_v36 = vld [vmem:[%s362_s1 + $0x58] sm:$0xff]  ;;  %v46_v37 = vld [vmem:[%s362_s1 + $0xe0] sm:$0xff] }
   0xa   :  { %186 = vmatprep.subr.bf16.mxu0 %v185_v14  ;;  %211 = vmatprep.subr.bf16.mxu1 %v185_v14  ;;  %v47_v38 = vld [vmem:[%s362_s1 + $0xe8] sm:$0xff]  ;;  %v199_v39 = vpack.c.bf16 %v29_v36, %v28_v35  ;;  %v30_v41 = vld [vmem:[%s362_s1 + $0x60] sm:$0xff]  ;;  %v48_v43 = vld [vmem:[%s362_s1 + $0xf0] sm:$0xff] }
   0xb   :  { %v201_v40 = vpack.c.bf16 %v47_v38, %v46_v37  ;;  %v31_v42 = vld [vmem:[%s362_s1 + $0x68] sm:$0xff]  ;;  %v49_v44 = vld [vmem:[%s362_s1 + $0xf8] sm:$0xff]  ;;  %v32_v47 = vld [vmem:[%s362_s1 + $0x70] sm:$0xff] }
   0xc   :  { %v203_v45 = vpack.c.bf16 %v31_v42, %v30_v41  ;;  %v205_v46 = vpack.c.bf16 %v49_v44, %v48_v43  ;;  %v33_v48 = vld [vmem:[%s362_s1 + $0x78] sm:$0xff]  ;;  %v14_v50 = vld [vmem:[%s363_s0] sm:$0xff]  ;;  %v16_v51 = vld [vmem:[%s363_s0 + $0x10] sm:$0xff] }
   0xd   :  { %188 = vmatpush3.bf16.msra.mxu0 %v187_v19  ;;  %219 = vmatpush3.bf16.msra.mxu1 %v187_v19  ;;  %v207_v49 = vpack.c.bf16 %v33_v48, %v32_v47  ;;  %v138_v54 = vld [vmem:[%s364_s2] ss:$0 sm:$0xff] }
   0xe   :  { %190 = vmatprep.subr.bf16.mxu0 %v189_v20  ;;  %212 = vmatprep.subr.bf16.mxu1 %v189_v20 }
  0x11   :  { %192 = vmatpush3.bf16.msra.mxu0 %v191_v27  ;;  %220 = vmatpush3.bf16.msra.mxu1 %v191_v27 }
  0x12   :  { %194 = vmatprep.subr.bf16.mxu0 %v193_v28  ;;  %213 = vmatprep.subr.bf16.mxu1 %v193_v28 }
  0x15   :  { %196 = vmatpush3.bf16.msra.mxu0 %v195_v33  ;;  %221 = vmatpush3.bf16.msra.mxu1 %v195_v33 }
  0x16   :  { %198 = vmatprep.subr.bf16.mxu0 %v197_v34  ;;  %214 = vmatprep.subr.bf16.mxu1 %v197_v34 }
  0x19   :  { %200 = vmatpush3.bf16.msra.mxu0 %v199_v39  ;;  %222 = vmatpush3.bf16.msra.mxu1 %v199_v39 }
  0x1a   :  { %202 = vmatprep.subr.bf16.mxu0 %v201_v40  ;;  %215 = vmatprep.subr.bf16.mxu1 %v201_v40 }
  0x1d   :  { %204 = vmatpush3.bf16.msra.mxu0 %v203_v45  ;;  %223 = vmatpush3.bf16.msra.mxu1 %v203_v45 }
  0x1e   :  { %206 = vmatprep.subr.bf16.mxu0 %v205_v46  ;;  %216 = vmatprep.subr.bf16.mxu1 %v205_v46 }
  0x21   :  { %208 = vmatpush3.bf16.msra.mxu0 %v207_v49  ;;  %224 = vmatpush3.bf16.msra.mxu1 %v207_v49 }
  0x24   :  { %122 = vmatmul.mubr.f32.vlgmr.msra.gmra.mrb[0].mxu0 %v14_v50  ;;  %127 = vmatmul.mubr.f32.vlgmr.msra.gmra.mrb[0].mxu1 %v16_v51 }
  0xf7   :  { %v171_v52 = vpop.f32.mrb[0].mxu0  ;;  %v174_v53 = vpop.f32.mrb[0].mxu1 }
  0xf8   :  { %v172_v55 = vpop.f32.mrb[1].mxu0  ;;  %v175_v56 = vpop.f32.mrb[1].mxu1 }
  0xf9   :  { %v173_v57 = vadd.f32 %v172_v55, %v171_v52  ;;  %v176_v58 = vadd.f32 %v175_v56, %v174_v53 }
  0xfb   :  { %v124_v59 = vadd.f32 %v173_v57, %v138_v54  ;;  %v129_v60 = vadd.f32 %v176_v58, %v138_v54 }
  0xfd   :  { %132 = vst [vmem:[%s365_s3] sm:$0xff] %v124_v59  ;;  %133 = vst [vmem:[%s365_s3 + $0x8] sm:$0xff] %v129_v60 }

</bundles_post_ra>
